<compile_context>
chip_gen: v7x
topology: tpu7x:2x2x1
jax: 0.10.0
libtpu: 0.0.40
codegen_flags: <defaults>
</compile_context>

<pallas_src>
import math

import jax
import jax.numpy as jnp
from jax.experimental import pallas as pl
from jax.experimental.pallas import tpu as pltpu


# ----------------------------- Pallas kernel --------------------------------

def _make_encoder_kernel(n_heads: int, head_dim: int, seq_len: int, q_block: int):
    H, dh, L, TQ = n_heads, head_dim, seq_len, q_block
    D = H * dh

    def _ln(x, g, b, eps=1e-12):
        mu = jnp.mean(x, axis=-1, keepdims=True)
        xc = x - mu
        var = jnp.mean(xc * xc, axis=-1, keepdims=True)
        return xc * jax.lax.rsqrt(var + eps) * g + b

    def _gelu(x):  # exact (erf) GELU, matching torch.nn.GELU default
        return 0.5 * x * (1.0 + jax.lax.erf(x * (1.0 / math.sqrt(2.0))))

    def kernel(x_ref, bias_ref, maskadd_ref,
               wqkv_ref, bqkv_ref, wo_ref, bo_ref,
               ln1g_ref, ln1b_ref,
               w1_ref, b1_ref, w2_ref, b2_ref,
               ln2g_ref, ln2b_ref,
               out_ref,
               xc_ref, q_ref, k_ref, v_ref):
        layer = pl.program_id(1)
        qt = pl.program_id(2)

        # ---- once per (batch, layer): fused QKV projection over full L ------
        @pl.when(qt == 0)
        def _():
            @pl.when(layer == 0)
            def _():
                # seed the layer-input carry with the embedding output
                xc_ref[...] = x_ref[...]

            xin = xc_ref[...]                                         # (L, D) f32
            qkv = (jnp.dot(xin.astype(jnp.bfloat16), wqkv_ref[...],
                           preferred_element_type=jnp.float32)
                   + bqkv_ref[...]).astype(jnp.bfloat16)              # (L, 3D)
            # cache head-major (H, L, dh) for head-batched attention matmuls
            for h in range(H):
                q_ref[h, :, :] = qkv[:, h * dh:(h + 1) * dh]
                k_ref[h, :, :] = qkv[:, D + h * dh:D + (h + 1) * dh]
                v_ref[h, :, :] = qkv[:, 2 * D + h * dh:2 * D + (h + 1) * dh]

        # ---- per q-tile: biased attention + residual/LN + GELU FFN ----------
        rows = pl.ds(pl.multiple_of(qt * TQ, TQ), TQ)
        x_rows = xc_ref[rows, :]                                      # (TQ, D) f32
        q_rows = q_ref[:, rows, :]                                    # (H, TQ, dh) bf16

        # head-batched scores on the MXU; 1/sqrt(dh) already folded into Wq
        s = jnp.einsum("hqd,hkd->hqk", q_rows, k_ref[...],
                       preferred_element_type=jnp.float32)            # (H, TQ, L)
        s = s + bias_ref[...].astype(jnp.float32) \
              + maskadd_ref[...].reshape(1, 1, L)
        s = s - jnp.max(s, axis=-1, keepdims=True)
        p = jnp.exp(s)
        p = p * pl.reciprocal(jnp.sum(p, axis=-1, keepdims=True), approx=True)

        ctx = jnp.einsum("hqk,hkd->hqd", p.astype(jnp.bfloat16), v_ref[...],
                         preferred_element_type=jnp.float32)          # (H, TQ, dh)
        attn = jnp.concatenate([ctx[h] for h in range(H)], axis=-1)   # (TQ, D)
        attn = jnp.dot(attn.astype(jnp.bfloat16), wo_ref[...],
                       preferred_element_type=jnp.float32) + bo_ref[...]

        # post-norm residual blocks (dropout == identity in eval); f32 math
        h1 = _ln(x_rows + attn, ln1g_ref[...], ln1b_ref[...])
        ff = _gelu(jnp.dot(h1.astype(jnp.bfloat16), w1_ref[...],
                           preferred_element_type=jnp.float32) + b1_ref[...])
        ff = jnp.dot(ff.astype(jnp.bfloat16), w2_ref[...],
                     preferred_element_type=jnp.float32) + b2_ref[...]
        y = _ln(h1 + ff, ln2g_ref[...], ln2b_ref[...])

        out_ref[...] = y
        # K/V for this layer are already cached, so these rows can be
        # overwritten in place to become the next layer's input.
        xc_ref[rows, :] = y

    return kernel


def _pick_q_block(seq_len: int, n_heads: int) -> int:
    """Largest q tile whose double-buffered bf16 bias block stays ~<12 MiB."""
    budget = 12 * 1024 * 1024
    if 2 * n_heads * seq_len * seq_len * 2 <= budget or seq_len % 8 != 0:
        return seq_len
    for cand in (512, 256, 128, 64, 32, 16, 8):
        if seq_len % cand == 0 and 2 * n_heads * cand * seq_len * 2 <= budget:
            return cand
    return 8


def _encoder_forward(x, attn_bias, mask_add, sp, *, n_heads, head_dim,
                     q_block=None):
    """x: (B, L, D) f32; attn_bias: (B, H, L, L) bf16; mask_add: (B, 1, L) f32."""
    B, L, D = x.shape
    H = n_heads
    n_layers = sp["wqkv"].shape[0]
    F = sp["w1"].shape[-1]

    TQ = q_block if q_block is not None else _pick_q_block(L, H)
    assert L % TQ == 0 and (TQ == L or TQ % 8 == 0)
    n_qt = L // TQ

    kernel = _make_encoder_kernel(H, head_dim, L, TQ)

    def wspec(r, c):  # per-layer stacked parameter, array shape (n_layers, r, c)
        return pl.BlockSpec((None, r, c), lambda b, l, t: (l, 0, 0))

    in_specs = [
        pl.BlockSpec((None, L, D), lambda b, l, t: (b, 0, 0)),         # x (resident per batch)
        pl.BlockSpec((None, H, TQ, L), lambda b, l, t: (b, 0, t, 0)),  # attn bias (bf16)
        pl.BlockSpec((None, 1, L), lambda b, l, t: (b, 0, 0)),         # additive key mask
        wspec(D, 3 * D), wspec(1, 3 * D),                              # wqkv, bqkv
        wspec(D, D), wspec(1, D),                                      # wo, bo
        wspec(1, D), wspec(1, D),                                      # ln1 g, b
        wspec(D, F), wspec(1, F),                                      # w1, b1
        wspec(F, D), wspec(1, D),                                      # w2, b2
        wspec(1, D), wspec(1, D),                                      # ln2 g, b
    ]

    # rough per-step VMEM need (double-buffered blocks + scratch); clamped so
    # it is safe on v7x (64 MiB physical) yet above v5e's 16 MiB scoped default.
    need = (2 * (H * TQ * L * 2)                         # bias block (bf16)
            + 2 * (L * D + TQ * D + L) * 4               # x, out, mask (f32)
            + 2 * (3 * D * D + D * D + 2 * D * F) * 2    # bf16 weights
            + 2 * (3 * D + 6 * D + 2 * F) * 4            # f32 biases / LN params
            + (L * D * 4 + 3 * H * L * head_dim * 2))    # scratch
    vmem_limit = int(min(max(need + (16 << 20), 32 << 20), 48 << 20))

    return pl.pallas_call(
        kernel,
        out_shape=jax.ShapeDtypeStruct((B, L, D), jnp.float32),
        grid=(B, n_layers, n_qt),
        in_specs=in_specs,
        out_specs=pl.BlockSpec((None, TQ, D), lambda b, l, t: (b, t, 0)),
        scratch_shapes=[
            pltpu.VMEM((L, D), jnp.float32),             # layer-input carry
            pltpu.VMEM((H, L, head_dim), jnp.bfloat16),  # Q (scaled)
            pltpu.VMEM((H, L, head_dim), jnp.bfloat16),  # K
            pltpu.VMEM((H, L, head_dim), jnp.bfloat16),  # V
        ],
        compiler_params=pltpu.CompilerParams(
            dimension_semantics=("parallel", "arbitrary", "arbitrary"),
            vmem_limit_bytes=vmem_limit),
    )(
        x, attn_bias, mask_add,
        sp["wqkv"], sp["bqkv"], sp["wo"], sp["bo"],
        sp["ln1_g"], sp["ln1_b"],
        sp["w1"], sp["b1"], sp["w2"], sp["b2"],
        sp["ln2_g"], sp["ln2_b"],
    )


# --------------------------- model (glue in JAX) -----------------------------

class PeTriPPIPallas:
    def __init__(self, vocab_size, seq_len, n_layers=2, n_heads=4,
                 query_dimensions=8, value_dimensions=8,
                 feed_forward_dimensions=64, n_disto_bins=8, key=None):
        assert n_layers >= 2
        self.vocab_size = vocab_size
        self.seq_len = seq_len
        self.n_layers = n_layers
        self.n_heads = n_heads
        self.head_dim = query_dimensions
        self.d_model = n_heads * query_dimensions
        self.ffn = feed_forward_dimensions
        self.n_disto_bins = n_disto_bins

        D, Fd, H = self.d_model, self.ffn, self.n_heads
        key = jax.random.PRNGKey(0) if key is None else key
        ks = iter(jax.random.split(key, 96))

        def w(shape, scale=0.02):
            return (scale * jax.random.normal(next(ks), shape)).astype(jnp.float32)

        # ---- PeTriPPIEmbedding ('learnable_weights_and_MLP') ----
        # TODO(synk): PeTriPPIEmbedding source not provided; structural/pairwise
        # feature MLPs below are a faithful-in-spirit reconstruction.
        self.tok_emb = w((vocab_size, D))
        self.pos_emb = w((seq_len, D))
        self.seg_emb = w((2, D))
        res_feat_dim = 3 + 9 + 1                      # coords + rots + plddt
        self.res_w1 = w((res_feat_dim, D)); self.res_b1 = w((D,))
        self.res_w2 = w((D, D));            self.res_b2 = w((D,))
        pair_feat_dim = 5                             # dist, pae, disto_mean, tm, same_chain
        self.pair_w = w((pair_feat_dim, H)); self.pair_b = w((H,))

        # ---- BiasedBERTEncoder layers (f32 master copy, used by reference) --
        # NOTE: weights act as x @ W; if importing a real torch nn.Linear
        # checkpoint (stored (out, in)), transpose at load time.
        self.layers = []
        for _ in range(n_layers):
            self.layers.append(dict(
                wq=w((D, D)), bq=w((1, D)),
                wk=w((D, D)), bk=w((1, D)),
                wv=w((D, D)), bv=w((1, D)),
                wo=w((D, D)), bo=w((1, D)),
                ln1_g=1.0 + w((1, D)), ln1_b=w((1, D)),
                w1=w((D, Fd)), b1=w((1, Fd)),
                w2=w((Fd, D)), b2=w((1, D)),
                ln2_g=1.0 + w((1, D)), ln2_b=w((1, D)),
            ))

        # ---- kernel-ready params: stacked over layers, QKV fused, 1/sqrt(dh)
        #      folded into Wq/bq, matmul weights bf16, biases/LN params f32 ---
        att_scale = 1.0 / math.sqrt(self.head_dim)
        st = lambda name: jnp.stack([p[name] for p in self.layers], axis=0)
        wqkv = jnp.concatenate([st("wq") * att_scale, st("wk"), st("wv")], -1)
        bqkv = jnp.concatenate([st("bq") * att_scale, st("bk"), st("bv")], -1)
        self.stacked = dict(
            wqkv=wqkv.astype(jnp.bfloat16), bqkv=bqkv,
            wo=st("wo").astype(jnp.bfloat16), bo=st("bo"),
            ln1_g=st("ln1_g"), ln1_b=st("ln1_b"),
            w1=st("w1").astype(jnp.bfloat16), b1=st("b1"),
            w2=st("w2").astype(jnp.bfloat16), b2=st("b2"),
            ln2_g=st("ln2_g"), ln2_b=st("ln2_b"),
        )

    # ---------------------------- embedding ---------------------------------
    def _embed(self, seqs, coords, rots, plddt, pae, disto_log, tm, segment_size):
        B, L = seqs.shape

        # token + position + segment embeddings
        x = self.tok_emb[seqs] + self.pos_emb[None, :, :]
        pos_idx = jnp.arange(L)[None, :]
        seg_ids = (pos_idx >= segment_size[:, None]).astype(jnp.int32)   # (B, L)
        x = x + self.seg_emb[seg_ids]

        # per-residue structural MLP
        res_feat = jnp.concatenate(
            [coords, rots.reshape(B, L, 9), plddt[..., None]], axis=-1)  # (B, L, 13)
        h = jax.nn.gelu(res_feat @ self.res_w1 + self.res_b1, approximate=False)
        x = x + h @ self.res_w2 + self.res_b2

        # pairwise structural features -> per-head additive attention bias
        diff = coords[:, :, None, :] - coords[:, None, :, :]
        dist = jnp.sqrt(jnp.sum(diff * diff, axis=-1) + 1e-8)            # (B, L, L)
        disto_mean = jnp.mean(disto_log, axis=-1)                        # (B, L, L)
        same_chain = (seg_ids[:, :, None] == seg_ids[:, None, :]).astype(jnp.float32)
        tm_b = jnp.broadcast_to(tm[:, None, None], (B, L, L))
        pair = jnp.stack([dist, pae, disto_mean, tm_b, same_chain], -1)  # (B, L, L, 5)
        bias = jnp.einsum("blmf,fh->bhlm", pair, self.pair_w) \
            + self.pair_b[None, :, None, None]                           # (B, H, L, L)
        return x.astype(jnp.float32), bias.astype(jnp.float32)

    # ----------------------------- forward -----------------------------------
    def __call__(self, seqs, coords, rots, attention_mask, plddt, pae,
                 disto_log, tm, segment_size, q_block=None):
        x, attn_bias = self._embed(seqs, coords, rots, plddt, pae,
                                   disto_log, tm, segment_size)
        # key-side additive mask (same semantics as the previous version)
        mask_add = ((1.0 - attention_mask.astype(jnp.float32)) * -1e9)[:, None, :]
        return _encoder_forward(x, attn_bias.astype(jnp.bfloat16), mask_add,
                                self.stacked, n_heads=self.n_heads,
                                head_dim=self.head_dim, q_block=q_block)

    # ---------------- pure-JAX f32 reference (for validation) ----------------
    def reference(self, seqs, coords, rots, attention_mask, plddt, pae,
                  disto_log, tm, segment_size):
        x, bias = self._embed(seqs, coords, rots, plddt, pae, disto_log, tm,
                              segment_size)
        B, L, D = x.shape
        H, dh = self.n_heads, self.head_dim
        mask_add = ((1.0 - attention_mask.astype(jnp.float32))
                    * -1e9)[:, None, None, :]
        scale = 1.0 / math.sqrt(dh)

        def ln(t, g, b, eps=1e-12):
            mu = t.mean(-1, keepdims=True)
            var = ((t - mu) ** 2).mean(-1, keepdims=True)
            return (t - mu) * jax.lax.rsqrt(var + eps) * g + b

        for p in self.layers:
            q = x @ p["wq"] + p["bq"]
            k = x @ p["wk"] + p["bk"]
            v = x @ p["wv"] + p["bv"]
            split = lambda t: t.reshape(B, L, H, dh).transpose(0, 2, 1, 3)
            s = jnp.einsum("bhqd,bhkd->bhqk", split(q), split(k)) * scale
            s = s + bias + mask_add
            a = jax.nn.softmax(s, axis=-1)
            ctx = jnp.einsum("bhqk,bhkd->bhqd", a, split(v))
            ctx = ctx.transpose(0, 2, 1, 3).reshape(B, L, D)
            attn = ctx @ p["wo"] + p["bo"]
            h1 = ln(x + attn, p["ln1_g"], p["ln1_b"])
            ff = jax.nn.gelu(h1 @ p["w1"] + p["b1"], approximate=False)
            ff = ff @ p["w2"] + p["b2"]
            x = ln(h1 + ff, p["ln2_g"], p["ln2_b"])
        return x


# --------------------------------- demo -------------------------------------

def _build_inputs(key, B, L, vocab, n_bins):
    ks = iter(jax.random.split(key, 16))
    seqs = jax.random.randint(next(ks), (B, L), 0, vocab, jnp.int32)
    coords = jax.random.normal(next(ks), (B, L, 3), jnp.float32)
    rots = jax.random.normal(next(ks), (B, L, 3, 3), jnp.float32)
    attention_mask = jnp.ones((B, L), jnp.float32).at[:, L - 1].set(0.0)
    plddt = jax.random.uniform(next(ks), (B, L), jnp.float32)
    pae = jax.random.uniform(next(ks), (B, L, L), jnp.float32) * 5.0
    disto_log = jax.random.normal(next(ks), (B, L, L, n_bins), jnp.float32)
    tm = jax.random.uniform(next(ks), (B,), jnp.float32)
    segment_size = (jnp.arange(B, dtype=jnp.int32) % 2) + L // 2
    return (seqs, coords, rots, attention_mask, plddt, pae, disto_log, tm,
            segment_size)


if __name__ == "__main__":
    vocab, n_heads, qdim, ffn, n_layers, n_bins = 24, 4, 8, 64, 2, 8

    # config 1: single q tile -> bias stays VMEM-resident across fused layers.
    # config 2: two q tiles (L=16, q_block=8) -> exercises the query-tiled /
    #           carry-overwrite path used for long sequences (v7x VMEM bound).
    for (B, L, q_block) in ((2, 8, None), (2, 16, 8)):
        model = PeTriPPIPallas(vocab, L, n_layers=n_layers, n_heads=n_heads,
                               query_dimensions=qdim, value_dimensions=qdim,
                               feed_forward_dimensions=ffn,
                               n_disto_bins=n_bins, key=jax.random.PRNGKey(0))
        inputs = _build_inputs(jax.random.PRNGKey(0), B, L, vocab, n_bins)

        out = model(*inputs, q_block=q_block)
        out = jax.block_until_ready(out)
        assert out.shape == (B, L, n_heads * qdim)
        assert bool(jnp.all(jnp.isfinite(out)))

        ref = model.reference(*inputs)
        max_err = float(jnp.max(jnp.abs(out - ref)))
        assert max_err < 5e-2, f"kernel vs reference mismatch: {max_err}"

    print("KERNEL_OK")
</pallas_src>

<mosaic_0001>
module attributes {stable_mosaic.version = 11 : i64} {
  func.func @kernel(%arg0: i32, %arg1: i32, %arg2: i32, %arg3: memref<1x8x32xf32, #tpu.memory_space<vmem>>, %arg4: memref<1x4x8x8xbf16, #tpu.memory_space<vmem>>, %arg5: memref<1x1x8xf32, #tpu.memory_space<vmem>>, %arg6: memref<1x32x96xbf16, #tpu.memory_space<vmem>>, %arg7: memref<1x1x96xf32, #tpu.memory_space<vmem>>, %arg8: memref<1x32x32xbf16, #tpu.memory_space<vmem>>, %arg9: memref<1x1x32xf32, #tpu.memory_space<vmem>>, %arg10: memref<1x1x32xf32, #tpu.memory_space<vmem>>, %arg11: memref<1x1x32xf32, #tpu.memory_space<vmem>>, %arg12: memref<1x32x64xbf16, #tpu.memory_space<vmem>>, %arg13: memref<1x1x64xf32, #tpu.memory_space<vmem>>, %arg14: memref<1x64x32xbf16, #tpu.memory_space<vmem>>, %arg15: memref<1x1x32xf32, #tpu.memory_space<vmem>>, %arg16: memref<1x1x32xf32, #tpu.memory_space<vmem>>, %arg17: memref<1x1x32xf32, #tpu.memory_space<vmem>>, %arg18: memref<1x8x32xf32, #tpu.memory_space<vmem>>, %arg19: memref<8x32xf32, #tpu.memory_space<vmem>>, %arg20: memref<4x8x8xbf16, #tpu.memory_space<vmem>>, %arg21: memref<4x8x8xbf16, #tpu.memory_space<vmem>>, %arg22: memref<4x8x8xbf16, #tpu.memory_space<vmem>>) attributes {dimension_semantics = [#tpu.dimension_semantics<parallel>, #tpu.dimension_semantics<arbitrary>, #tpu.dimension_semantics<arbitrary>], iteration_bounds = array<i64: 2, 2, 1>, scalar_prefetch = 0 : i64, scratch_operands = 4 : i64, tpu.core_type = #tpu.core_type<tc>, window_params = [{transform_indices = @transform_0, window_bounds = array<i64: 1, 8, 32>}, {transform_indices = @transform_1, window_bounds = array<i64: 1, 4, 8, 8>}, {transform_indices = @transform_2, window_bounds = array<i64: 1, 1, 8>}, {transform_indices = @transform_3, window_bounds = array<i64: 1, 32, 96>}, {transform_indices = @transform_4, window_bounds = array<i64: 1, 1, 96>}, {transform_indices = @transform_5, window_bounds = array<i64: 1, 32, 32>}, {transform_indices = @transform_6, window_bounds = array<i64: 1, 1, 32>}, {transform_indices = @transform_7, window_bounds = array<i64: 1, 1, 32>}, {transform_indices = @transform_8, window_bounds = array<i64: 1, 1, 32>}, {transform_indices = @transform_9, window_bounds = array<i64: 1, 32, 64>}, {transform_indices = @transform_10, window_bounds = array<i64: 1, 1, 64>}, {transform_indices = @transform_11, window_bounds = array<i64: 1, 64, 32>}, {transform_indices = @transform_12, window_bounds = array<i64: 1, 1, 32>}, {transform_indices = @transform_13, window_bounds = array<i64: 1, 1, 32>}, {transform_indices = @transform_14, window_bounds = array<i64: 1, 1, 32>}, {transform_indices = @transform_15, window_bounds = array<i64: 1, 8, 32>}]} {
    %c0_i32 = arith.constant 0 : i32
    %0 = arith.cmpi eq, %arg2, %c0_i32 : i32
    %1 = arith.extui %0 : i1 to i32
    %c0_i32_0 = arith.constant 0 : i32
    %2 = arith.cmpi ne, %1, %c0_i32_0 : i32
    scf.if %2 {
      %c0_i32_69 = arith.constant 0 : i32
      %129 = arith.cmpi eq, %arg1, %c0_i32_69 : i32
      %130 = arith.extui %129 : i1 to i32
      %c0_i32_70 = arith.constant 0 : i32
      %131 = arith.cmpi ne, %130, %c0_i32_70 : i32
      scf.if %131 {
        %c0_113 = arith.constant 0 : index
        %c0_114 = arith.constant 0 : index
        %c0_115 = arith.constant 0 : index
        %190 = vector.load %arg3[%c0_113, %c0_114, %c0_115] : memref<1x8x32xf32, #tpu.memory_space<vmem>>, vector<1x8x32xf32>
        %191 = vector.shape_cast %190 : vector<1x8x32xf32> to vector<8x32xf32>
        %c0_116 = arith.constant 0 : index
        %c0_117 = arith.constant 0 : index
        %192 = vector.load %arg19[%c0_116, %c0_117] : memref<8x32xf32, #tpu.memory_space<vmem>>, vector<8x32xf32>
        tpu.vector_store %arg19[%c0_116, %c0_117], %191 {strides = array<i32>} : memref<8x32xf32, #tpu.memory_space<vmem>>, vector<8x32xf32>,
      } else {
      }
      %c0_71 = arith.constant 0 : index
      %c0_72 = arith.constant 0 : index
      %132 = vector.load %arg19[%c0_71, %c0_72] : memref<8x32xf32, #tpu.memory_space<vmem>>, vector<8x32xf32>
      %133 = arith.truncf %132 : vector<8x32xf32> to vector<8x32xbf16>
      %c0_73 = arith.constant 0 : index
      %c0_74 = arith.constant 0 : index
      %c0_75 = arith.constant 0 : index
      %134 = vector.load %arg6[%c0_73, %c0_74, %c0_75] : memref<1x32x96xbf16, #tpu.memory_space<vmem>>, vector<1x32x96xbf16>
      %135 = vector.shape_cast %134 : vector<1x32x96xbf16> to vector<32x96xbf16>
      %cst_76 = arith.constant dense<0.000000e+00> : vector<8x96xf32>
      %136 = tpu.matmul %133, %135, %cst_76 {dimension_numbers = #tpu.dot_dimension_numbers<[1], [0], [0], [1], [0, 0, 1, 1], [], []>} : vector<8x32xbf16>, vector<32x96xbf16>, vector<8x96xf32> -> vector<8x96xf32>
      %c0_77 = arith.constant 0 : index
      %c0_78 = arith.constant 0 : index
      %c0_79 = arith.constant 0 : index
      %137 = vector.load %arg7[%c0_77, %c0_78, %c0_79] : memref<1x1x96xf32, #tpu.memory_space<vmem>>, vector<1x1x96xf32>
      %138 = vector.shape_cast %137 : vector<1x1x96xf32> to vector<1x96xf32>
      %139 = vector.broadcast %138 : vector<1x96xf32> to vector<8x96xf32>
      %140 = arith.addf %136, %139 : vector<8x96xf32>
      %141 = arith.truncf %140 : vector<8x96xf32> to vector<8x96xbf16>
      %142 = vector.extract_strided_slice %141 {offsets = [0, 0], sizes = [8, 8], strides = [1, 1]} : vector<8x96xbf16> to vector<8x8xbf16>
      %c0_80 = arith.constant 0 : index
      %c0_81 = arith.constant 0 : index
      %c0_82 = arith.constant 0 : index
      %143 = vector.load %arg20[%c0_80, %c0_81, %c0_82] : memref<4x8x8xbf16, #tpu.memory_space<vmem>>, vector<1x8x8xbf16>
      %144 = vector.shape_cast %143 : vector<1x8x8xbf16> to vector<8x8xbf16>
      %145 = vector.shape_cast %142 : vector<8x8xbf16> to vector<1x8x8xbf16>
      tpu.vector_store %arg20[%c0_80, %c0_81, %c0_82], %145 {strides = array<i32>} : memref<4x8x8xbf16, #tpu.memory_space<vmem>>, vector<1x8x8xbf16>,
      %146 = vector.extract_strided_slice %141 {offsets = [0, 32], sizes = [8, 8], strides = [1, 1]} : vector<8x96xbf16> to vector<8x8xbf16>
      %c0_83 = arith.constant 0 : index
      %c0_84 = arith.constant 0 : index
      %c0_85 = arith.constant 0 : index
      %147 = vector.load %arg21[%c0_83, %c0_84, %c0_85] : memref<4x8x8xbf16, #tpu.memory_space<vmem>>, vector<1x8x8xbf16>
      %148 = vector.shape_cast %147 : vector<1x8x8xbf16> to vector<8x8xbf16>
      %149 = vector.shape_cast %146 : vector<8x8xbf16> to vector<1x8x8xbf16>
      tpu.vector_store %arg21[%c0_83, %c0_84, %c0_85], %149 {strides = array<i32>} : memref<4x8x8xbf16, #tpu.memory_space<vmem>>, vector<1x8x8xbf16>,
      %150 = vector.extract_strided_slice %141 {offsets = [0, 64], sizes = [8, 8], strides = [1, 1]} : vector<8x96xbf16> to vector<8x8xbf16>
      %c0_86 = arith.constant 0 : index
      %c0_87 = arith.constant 0 : index
      %c0_88 = arith.constant 0 : index
      %151 = vector.load %arg22[%c0_86, %c0_87, %c0_88] : memref<4x8x8xbf16, #tpu.memory_space<vmem>>, vector<1x8x8xbf16>
      %152 = vector.shape_cast %151 : vector<1x8x8xbf16> to vector<8x8xbf16>
      %153 = vector.shape_cast %150 : vector<8x8xbf16> to vector<1x8x8xbf16>
      tpu.vector_store %arg22[%c0_86, %c0_87, %c0_88], %153 {strides = array<i32>} : memref<4x8x8xbf16, #tpu.memory_space<vmem>>, vector<1x8x8xbf16>,
      %154 = vector.extract_strided_slice %141 {offsets = [0, 8], sizes = [8, 8], strides = [1, 1]} : vector<8x96xbf16> to vector<8x8xbf16>
      %c1 = arith.constant 1 : index
      %c0_89 = arith.constant 0 : index
      %c0_90 = arith.constant 0 : index
      %155 = vector.load %arg20[%c1, %c0_89, %c0_90] : memref<4x8x8xbf16, #tpu.memory_space<vmem>>, vector<1x8x8xbf16>
      %156 = vector.shape_cast %155 : vector<1x8x8xbf16> to vector<8x8xbf16>
      %157 = vector.shape_cast %154 : vector<8x8xbf16> to vector<1x8x8xbf16>
      tpu.vector_store %arg20[%c1, %c0_89, %c0_90], %157 {strides = array<i32>} : memref<4x8x8xbf16, #tpu.memory_space<vmem>>, vector<1x8x8xbf16>,
      %158 = vector.extract_strided_slice %141 {offsets = [0, 40], sizes = [8, 8], strides = [1, 1]} : vector<8x96xbf16> to vector<8x8xbf16>
      %c1_91 = arith.constant 1 : index
      %c0_92 = arith.constant 0 : index
      %c0_93 = arith.constant 0 : index
      %159 = vector.load %arg21[%c1_91, %c0_92, %c0_93] : memref<4x8x8xbf16, #tpu.memory_space<vmem>>, vector<1x8x8xbf16>
      %160 = vector.shape_cast %159 : vector<1x8x8xbf16> to vector<8x8xbf16>
      %161 = vector.shape_cast %158 : vector<8x8xbf16> to vector<1x8x8xbf16>
      tpu.vector_store %arg21[%c1_91, %c0_92, %c0_93], %161 {strides = array<i32>} : memref<4x8x8xbf16, #tpu.memory_space<vmem>>, vector<1x8x8xbf16>,
      %162 = vector.extract_strided_slice %141 {offsets = [0, 72], sizes = [8, 8], strides = [1, 1]} : vector<8x96xbf16> to vector<8x8xbf16>
      %c1_94 = arith.constant 1 : index
      %c0_95 = arith.constant 0 : index
      %c0_96 = arith.constant 0 : index
      %163 = vector.load %arg22[%c1_94, %c0_95, %c0_96] : memref<4x8x8xbf16, #tpu.memory_space<vmem>>, vector<1x8x8xbf16>
      %164 = vector.shape_cast %163 : vector<1x8x8xbf16> to vector<8x8xbf16>
      %165 = vector.shape_cast %162 : vector<8x8xbf16> to vector<1x8x8xbf16>
      tpu.vector_store %arg22[%c1_94, %c0_95, %c0_96], %165 {strides = array<i32>} : memref<4x8x8xbf16, #tpu.memory_space<vmem>>, vector<1x8x8xbf16>,
      %166 = vector.extract_strided_slice %141 {offsets = [0, 16], sizes = [8, 8], strides = [1, 1]} : vector<8x96xbf16> to vector<8x8xbf16>
      %c2 = arith.constant 2 : index
      %c0_97 = arith.constant 0 : index
      %c0_98 = arith.constant 0 : index
      %167 = vector.load %arg20[%c2, %c0_97, %c0_98] : memref<4x8x8xbf16, #tpu.memory_space<vmem>>, vector<1x8x8xbf16>
      %168 = vector.shape_cast %167 : vector<1x8x8xbf16> to vector<8x8xbf16>
      %169 = vector.shape_cast %166 : vector<8x8xbf16> to vector<1x8x8xbf16>
      tpu.vector_store %arg20[%c2, %c0_97, %c0_98], %169 {strides = array<i32>} : memref<4x8x8xbf16, #tpu.memory_space<vmem>>, vector<1x8x8xbf16>,
      %170 = vector.extract_strided_slice %141 {offsets = [0, 48], sizes = [8, 8], strides = [1, 1]} : vector<8x96xbf16> to vector<8x8xbf16>
      %c2_99 = arith.constant 2 : index
      %c0_100 = arith.constant 0 : index
      %c0_101 = arith.constant 0 : index
      %171 = vector.load %arg21[%c2_99, %c0_100, %c0_101] : memref<4x8x8xbf16, #tpu.memory_space<vmem>>, vector<1x8x8xbf16>
      %172 = vector.shape_cast %171 : vector<1x8x8xbf16> to vector<8x8xbf16>
      %173 = vector.shape_cast %170 : vector<8x8xbf16> to vector<1x8x8xbf16>
      tpu.vector_store %arg21[%c2_99, %c0_100, %c0_101], %173 {strides = array<i32>} : memref<4x8x8xbf16, #tpu.memory_space<vmem>>, vector<1x8x8xbf16>,
      %174 = vector.extract_strided_slice %141 {offsets = [0, 80], sizes = [8, 8], strides = [1, 1]} : vector<8x96xbf16> to vector<8x8xbf16>
      %c2_102 = arith.constant 2 : index
      %c0_103 = arith.constant 0 : index
      %c0_104 = arith.constant 0 : index
      %175 = vector.load %arg22[%c2_102, %c0_103, %c0_104] : memref<4x8x8xbf16, #tpu.memory_space<vmem>>, vector<1x8x8xbf16>
      %176 = vector.shape_cast %175 : vector<1x8x8xbf16> to vector<8x8xbf16>
      %177 = vector.shape_cast %174 : vector<8x8xbf16> to vector<1x8x8xbf16>
      tpu.vector_store %arg22[%c2_102, %c0_103, %c0_104], %177 {strides = array<i32>} : memref<4x8x8xbf16, #tpu.memory_space<vmem>>, vector<1x8x8xbf16>,
      %178 = vector.extract_strided_slice %141 {offsets = [0, 24], sizes = [8, 8], strides = [1, 1]} : vector<8x96xbf16> to vector<8x8xbf16>
      %c3 = arith.constant 3 : index
      %c0_105 = arith.constant 0 : index
      %c0_106 = arith.constant 0 : index
      %179 = vector.load %arg20[%c3, %c0_105, %c0_106] : memref<4x8x8xbf16, #tpu.memory_space<vmem>>, vector<1x8x8xbf16>
      %180 = vector.shape_cast %179 : vector<1x8x8xbf16> to vector<8x8xbf16>
      %181 = vector.shape_cast %178 : vector<8x8xbf16> to vector<1x8x8xbf16>
      tpu.vector_store %arg20[%c3, %c0_105, %c0_106], %181 {strides = array<i32>} : memref<4x8x8xbf16, #tpu.memory_space<vmem>>, vector<1x8x8xbf16>,
      %182 = vector.extract_strided_slice %141 {offsets = [0, 56], sizes = [8, 8], strides = [1, 1]} : vector<8x96xbf16> to vector<8x8xbf16>
      %c3_107 = arith.constant 3 : index
      %c0_108 = arith.constant 0 : index
      %c0_109 = arith.constant 0 : index
      %183 = vector.load %arg21[%c3_107, %c0_108, %c0_109] : memref<4x8x8xbf16, #tpu.memory_space<vmem>>, vector<1x8x8xbf16>
      %184 = vector.shape_cast %183 : vector<1x8x8xbf16> to vector<8x8xbf16>
      %185 = vector.shape_cast %182 : vector<8x8xbf16> to vector<1x8x8xbf16>
      tpu.vector_store %arg21[%c3_107, %c0_108, %c0_109], %185 {strides = array<i32>} : memref<4x8x8xbf16, #tpu.memory_space<vmem>>, vector<1x8x8xbf16>,
      %186 = vector.extract_strided_slice %141 {offsets = [0, 88], sizes = [8, 8], strides = [1, 1]} : vector<8x96xbf16> to vector<8x8xbf16>
      %c3_110 = arith.constant 3 : index
      %c0_111 = arith.constant 0 : index
      %c0_112 = arith.constant 0 : index
      %187 = vector.load %arg22[%c3_110, %c0_111, %c0_112] : memref<4x8x8xbf16, #tpu.memory_space<vmem>>, vector<1x8x8xbf16>
      %188 = vector.shape_cast %187 : vector<1x8x8xbf16> to vector<8x8xbf16>
      %189 = vector.shape_cast %186 : vector<8x8xbf16> to vector<1x8x8xbf16>
      tpu.vector_store %arg22[%c3_110, %c0_111, %c0_112], %189 {strides = array<i32>} : memref<4x8x8xbf16, #tpu.memory_space<vmem>>, vector<1x8x8xbf16>,
    } else {
    }
    %c8_i32 = arith.constant 8 : i32
    %3 = arith.muli %arg2, %c8_i32 : i32
    %4 = tpu.assume_multiple %3, 8 : i32
    %5 = arith.index_cast %4 : i32 to index
    %c0 = arith.constant 0 : index
    %6 = vector.load %arg19[%5, %c0] : memref<8x32xf32, #tpu.memory_space<vmem>>, vector<8x32xf32>
    %c0_1 = arith.constant 0 : index
    %7 = arith.index_cast %4 : i32 to index
    %c0_2 = arith.constant 0 : index
    %8 = vector.load %arg20[%c0_1, %7, %c0_2] : memref<4x8x8xbf16, #tpu.memory_space<vmem>>, vector<4x8x8xbf16>
    %c0_3 = arith.constant 0 : index
    %c0_4 = arith.constant 0 : index
    %c0_5 = arith.constant 0 : index
    %9 = vector.load %arg21[%c0_3, %c0_4, %c0_5] : memref<4x8x8xbf16, #tpu.memory_space<vmem>>, vector<4x8x8xbf16>
    "tpu.trace_start"() <{level = 10 : i32, message = "hqd,hkd->hqk"}> : () -> ()
    %cst = arith.constant dense<0.000000e+00> : vector<4x8x8xf32>
    %10 = tpu.matmul %8, %9, %cst {dimension_numbers = #tpu.dot_dimension_numbers<[2], [2], [1], [1], [0, 0, 0, 1, 1, 1], [0], [0]>} : vector<4x8x8xbf16>, vector<4x8x8xbf16>, vector<4x8x8xf32> -> vector<4x8x8xf32>
    "tpu.trace_stop"() : () -> ()
    %c0_6 = arith.constant 0 : index
    %c0_7 = arith.constant 0 : index
    %c0_8 = arith.constant 0 : index
    %c0_9 = arith.constant 0 : index
    %11 = vector.load %arg4[%c0_6, %c0_7, %c0_8, %c0_9] : memref<1x4x8x8xbf16, #tpu.memory_space<vmem>>, vector<1x4x8x8xbf16>
    %12 = vector.shape_cast %11 : vector<1x4x8x8xbf16> to vector<4x8x8xbf16>
    %13 = arith.extf %12 : vector<4x8x8xbf16> to vector<4x8x8xf32>
    %14 = arith.addf %10, %13 : vector<4x8x8xf32>
    %c0_10 = arith.constant 0 : index
    %c0_11 = arith.constant 0 : index
    %c0_12 = arith.constant 0 : index
    %15 = vector.load %arg5[%c0_10, %c0_11, %c0_12] : memref<1x1x8xf32, #tpu.memory_space<vmem>>, vector<1x1x8xf32>
    %16 = vector.shape_cast %15 : vector<1x1x8xf32> to vector<1x8xf32>
    %17 = vector.shape_cast %16 : vector<1x8xf32> to vector<1x1x8xf32>
    %18 = vector.broadcast %17 : vector<1x1x8xf32> to vector<4x8x8xf32>
    %19 = arith.addf %14, %18 : vector<4x8x8xf32>
    %cst_13 = arith.constant dense<0xFF800000> : vector<4x8xf32>
    %20 = vector.multi_reduction <maximumf>, %19, %cst_13 [2] : vector<4x8x8xf32> to vector<4x8xf32>
    %21 = vector.shape_cast %20 : vector<4x8xf32> to vector<4x8x1xf32>
    %22 = vector.broadcast %21 : vector<4x8x1xf32> to vector<4x8x8xf32>
    %23 = arith.subf %19, %22 : vector<4x8x8xf32>
    %24 = math.exp %23 : vector<4x8x8xf32>
    %cst_14 = arith.constant dense<0.000000e+00> : vector<4x8xf32>
    %25 = vector.multi_reduction <add>, %24, %cst_14 [2] : vector<4x8x8xf32> to vector<4x8xf32>
    %26 = vector.shape_cast %25 : vector<4x8xf32> to vector<4x8x1xf32>
    %27 = tpu.reciprocal %26 {approx = true} : vector<4x8x1xf32> -> vector<4x8x1xf32>
    %28 = vector.broadcast %27 : vector<4x8x1xf32> to vector<4x8x8xf32>
    %29 = arith.mulf %24, %28 : vector<4x8x8xf32>
    %30 = arith.truncf %29 : vector<4x8x8xf32> to vector<4x8x8xbf16>
    %c0_15 = arith.constant 0 : index
    %c0_16 = arith.constant 0 : index
    %c0_17 = arith.constant 0 : index
    %31 = vector.load %arg22[%c0_15, %c0_16, %c0_17] : memref<4x8x8xbf16, #tpu.memory_space<vmem>>, vector<4x8x8xbf16>
    "tpu.trace_start"() <{level = 10 : i32, message = "hqk,hkd->hqd"}> : () -> ()
    %cst_18 = arith.constant dense<0.000000e+00> : vector<4x8x8xf32>
    %32 = tpu.matmul %30, %31, %cst_18 {dimension_numbers = #tpu.dot_dimension_numbers<[2], [1], [1], [2], [0, 0, 0, 1, 1, 2], [0], [0]>} : vector<4x8x8xbf16>, vector<4x8x8xbf16>, vector<4x8x8xf32> -> vector<4x8x8xf32>
    "tpu.trace_stop"() : () -> ()
    %33 = vector.extract_strided_slice %32 {offsets = [0, 0, 0], sizes = [1, 8, 8], strides = [1, 1, 1]} : vector<4x8x8xf32> to vector<1x8x8xf32>
    %34 = vector.shape_cast %33 : vector<1x8x8xf32> to vector<8x8xf32>
    %35 = vector.extract_strided_slice %32 {offsets = [1, 0, 0], sizes = [1, 8, 8], strides = [1, 1, 1]} : vector<4x8x8xf32> to vector<1x8x8xf32>
    %36 = vector.shape_cast %35 : vector<1x8x8xf32> to vector<8x8xf32>
    %37 = vector.extract_strided_slice %32 {offsets = [2, 0, 0], sizes = [1, 8, 8], strides = [1, 1, 1]} : vector<4x8x8xf32> to vector<1x8x8xf32>
    %38 = vector.shape_cast %37 : vector<1x8x8xf32> to vector<8x8xf32>
    %39 = vector.extract_strided_slice %32 {offsets = [3, 0, 0], sizes = [1, 8, 8], strides = [1, 1, 1]} : vector<4x8x8xf32> to vector<1x8x8xf32>
    %40 = vector.shape_cast %39 : vector<1x8x8xf32> to vector<8x8xf32>
    %41 = tpu.concatenate %34, %36, %38, %40 in 1 : vector<8x8xf32>, vector<8x8xf32>, vector<8x8xf32>, vector<8x8xf32> -> vector<8x32xf32>
    %42 = arith.truncf %41 : vector<8x32xf32> to vector<8x32xbf16>
    %c0_19 = arith.constant 0 : index
    %c0_20 = arith.constant 0 : index
    %c0_21 = arith.constant 0 : index
    %43 = vector.load %arg8[%c0_19, %c0_20, %c0_21] : memref<1x32x32xbf16, #tpu.memory_space<vmem>>, vector<1x32x32xbf16>
    %44 = vector.shape_cast %43 : vector<1x32x32xbf16> to vector<32x32xbf16>
    %cst_22 = arith.constant dense<0.000000e+00> : vector<8x32xf32>
    %45 = tpu.matmul %42, %44, %cst_22 {dimension_numbers = #tpu.dot_dimension_numbers<[1], [0], [0], [1], [0, 0, 1, 1], [], []>} : vector<8x32xbf16>, vector<32x32xbf16>, vector<8x32xf32> -> vector<8x32xf32>
    %c0_23 = arith.constant 0 : index
    %c0_24 = arith.constant 0 : index
    %c0_25 = arith.constant 0 : index
    %46 = vector.load %arg9[%c0_23, %c0_24, %c0_25] : memref<1x1x32xf32, #tpu.memory_space<vmem>>, vector<1x1x32xf32>
    %47 = vector.shape_cast %46 : vector<1x1x32xf32> to vector<1x32xf32>
    %48 = vector.broadcast %47 : vector<1x32xf32> to vector<8x32xf32>
    %49 = arith.addf %45, %48 : vector<8x32xf32>
    %50 = arith.addf %6, %49 : vector<8x32xf32>
    %c0_26 = arith.constant 0 : index
    %c0_27 = arith.constant 0 : index
    %c0_28 = arith.constant 0 : index
    %51 = vector.load %arg10[%c0_26, %c0_27, %c0_28] : memref<1x1x32xf32, #tpu.memory_space<vmem>>, vector<1x1x32xf32>
    %52 = vector.shape_cast %51 : vector<1x1x32xf32> to vector<1x32xf32>
    %c0_29 = arith.constant 0 : index
    %c0_30 = arith.constant 0 : index
    %c0_31 = arith.constant 0 : index
    %53 = vector.load %arg11[%c0_29, %c0_30, %c0_31] : memref<1x1x32xf32, #tpu.memory_space<vmem>>, vector<1x1x32xf32>
    %54 = vector.shape_cast %53 : vector<1x1x32xf32> to vector<1x32xf32>
    %cst_32 = arith.constant dense<0.000000e+00> : vector<8xf32>
    %55 = vector.multi_reduction <add>, %50, %cst_32 [1] : vector<8x32xf32> to vector<8xf32>
    %56 = vector.shape_cast %55 : vector<8xf32> to vector<8x1xf32>
    %cst_33 = arith.constant 3.200000e+01 : f32
    %57 = vector.broadcast %cst_33 : f32 to vector<8x1xf32>
    %58 = arith.divf %56, %57 : vector<8x1xf32>
    %59 = vector.broadcast %58 : vector<8x1xf32> to vector<8x32xf32>
    %60 = arith.subf %50, %59 : vector<8x32xf32>
    %61 = arith.mulf %60, %60 : vector<8x32xf32>
    %cst_34 = arith.constant dense<0.000000e+00> : vector<8xf32>
    %62 = vector.multi_reduction <add>, %61, %cst_34 [1] : vector<8x32xf32> to vector<8xf32>
    %63 = vector.shape_cast %62 : vector<8xf32> to vector<8x1xf32>
    %cst_35 = arith.constant 3.200000e+01 : f32
    %64 = vector.broadcast %cst_35 : f32 to vector<8x1xf32>
    %65 = arith.divf %63, %64 : vector<8x1xf32>
    %cst_36 = arith.constant 9.99999996E-13 : f32
    %66 = vector.broadcast %cst_36 : f32 to vector<8x1xf32>
    %67 = arith.addf %65, %66 : vector<8x1xf32>
    %68 = math.rsqrt %67 : vector<8x1xf32>
    %69 = vector.broadcast %68 : vector<8x1xf32> to vector<8x32xf32>
    %70 = arith.mulf %60, %69 : vector<8x32xf32>
    %71 = vector.broadcast %52 : vector<1x32xf32> to vector<8x32xf32>
    %72 = arith.mulf %70, %71 : vector<8x32xf32>
    %73 = vector.broadcast %54 : vector<1x32xf32> to vector<8x32xf32>
    %74 = arith.addf %72, %73 : vector<8x32xf32>
    %75 = arith.truncf %74 : vector<8x32xf32> to vector<8x32xbf16>
    %c0_37 = arith.constant 0 : index
    %c0_38 = arith.constant 0 : index
    %c0_39 = arith.constant 0 : index
    %76 = vector.load %arg12[%c0_37, %c0_38, %c0_39] : memref<1x32x64xbf16, #tpu.memory_space<vmem>>, vector<1x32x64xbf16>
    %77 = vector.shape_cast %76 : vector<1x32x64xbf16> to vector<32x64xbf16>
    %cst_40 = arith.constant dense<0.000000e+00> : vector<8x64xf32>
    %78 = tpu.matmul %75, %77, %cst_40 {dimension_numbers = #tpu.dot_dimension_numbers<[1], [0], [0], [1], [0, 0, 1, 1], [], []>} : vector<8x32xbf16>, vector<32x64xbf16>, vector<8x64xf32> -> vector<8x64xf32>
    %c0_41 = arith.constant 0 : index
    %c0_42 = arith.constant 0 : index
    %c0_43 = arith.constant 0 : index
    %79 = vector.load %arg13[%c0_41, %c0_42, %c0_43] : memref<1x1x64xf32, #tpu.memory_space<vmem>>, vector<1x1x64xf32>
    %80 = vector.shape_cast %79 : vector<1x1x64xf32> to vector<1x64xf32>
    %81 = vector.broadcast %80 : vector<1x64xf32> to vector<8x64xf32>
    %82 = arith.addf %78, %81 : vector<8x64xf32>
    %cst_44 = arith.constant 5.000000e-01 : f32
    %83 = vector.broadcast %cst_44 : f32 to vector<8x64xf32>
    %84 = arith.mulf %83, %82 : vector<8x64xf32>
    %cst_45 = arith.constant 0.707106769 : f32
    %85 = vector.broadcast %cst_45 : f32 to vector<8x64xf32>
    %86 = arith.mulf %82, %85 : vector<8x64xf32>
    %87 = math.erf %86 : vector<8x64xf32>
    %cst_46 = arith.constant 1.000000e+00 : f32
    %88 = vector.broadcast %cst_46 : f32 to vector<8x64xf32>
    %89 = arith.addf %88, %87 : vector<8x64xf32>
    %90 = arith.mulf %84, %89 : vector<8x64xf32>
    %91 = arith.truncf %90 : vector<8x64xf32> to vector<8x64xbf16>
    %c0_47 = arith.constant 0 : index
    %c0_48 = arith.constant 0 : index
    %c0_49 = arith.constant 0 : index
    %92 = vector.load %arg14[%c0_47, %c0_48, %c0_49] : memref<1x64x32xbf16, #tpu.memory_space<vmem>>, vector<1x64x32xbf16>
    %93 = vector.shape_cast %92 : vector<1x64x32xbf16> to vector<64x32xbf16>
    %cst_50 = arith.constant dense<0.000000e+00> : vector<8x32xf32>
    %94 = tpu.matmul %91, %93, %cst_50 {dimension_numbers = #tpu.dot_dimension_numbers<[1], [0], [0], [1], [0, 0, 1, 1], [], []>} : vector<8x64xbf16>, vector<64x32xbf16>, vector<8x32xf32> -> vector<8x32xf32>
    %c0_51 = arith.constant 0 : index
    %c0_52 = arith.constant 0 : index
    %c0_53 = arith.constant 0 : index
    %95 = vector.load %arg15[%c0_51, %c0_52, %c0_53] : memref<1x1x32xf32, #tpu.memory_space<vmem>>, vector<1x1x32xf32>
    %96 = vector.shape_cast %95 : vector<1x1x32xf32> to vector<1x32xf32>
    %97 = vector.broadcast %96 : vector<1x32xf32> to vector<8x32xf32>
    %98 = arith.addf %94, %97 : vector<8x32xf32>
    %99 = arith.addf %74, %98 : vector<8x32xf32>
    %c0_54 = arith.constant 0 : index
    %c0_55 = arith.constant 0 : index
    %c0_56 = arith.constant 0 : index
    %100 = vector.load %arg16[%c0_54, %c0_55, %c0_56] : memref<1x1x32xf32, #tpu.memory_space<vmem>>, vector<1x1x32xf32>
    %101 = vector.shape_cast %100 : vector<1x1x32xf32> to vector<1x32xf32>
    %c0_57 = arith.constant 0 : index
    %c0_58 = arith.constant 0 : index
    %c0_59 = arith.constant 0 : index
    %102 = vector.load %arg17[%c0_57, %c0_58, %c0_59] : memref<1x1x32xf32, #tpu.memory_space<vmem>>, vector<1x1x32xf32>
    %103 = vector.shape_cast %102 : vector<1x1x32xf32> to vector<1x32xf32>
    %cst_60 = arith.constant dense<0.000000e+00> : vector<8xf32>
    %104 = vector.multi_reduction <add>, %99, %cst_60 [1] : vector<8x32xf32> to vector<8xf32>
    %105 = vector.shape_cast %104 : vector<8xf32> to vector<8x1xf32>
    %cst_61 = arith.constant 3.200000e+01 : f32
    %106 = vector.broadcast %cst_61 : f32 to vector<8x1xf32>
    %107 = arith.divf %105, %106 : vector<8x1xf32>
    %108 = vector.broadcast %107 : vector<8x1xf32> to vector<8x32xf32>
    %109 = arith.subf %99, %108 : vector<8x32xf32>
    %110 = arith.mulf %109, %109 : vector<8x32xf32>
    %cst_62 = arith.constant dense<0.000000e+00> : vector<8xf32>
    %111 = vector.multi_reduction <add>, %110, %cst_62 [1] : vector<8x32xf32> to vector<8xf32>
    %112 = vector.shape_cast %111 : vector<8xf32> to vector<8x1xf32>
    %cst_63 = arith.constant 3.200000e+01 : f32
    %113 = vector.broadcast %cst_63 : f32 to vector<8x1xf32>
    %114 = arith.divf %112, %113 : vector<8x1xf32>
    %cst_64 = arith.constant 9.99999996E-13 : f32
    %115 = vector.broadcast %cst_64 : f32 to vector<8x1xf32>
    %116 = arith.addf %114, %115 : vector<8x1xf32>
    %117 = math.rsqrt %116 : vector<8x1xf32>
    %118 = vector.broadcast %117 : vector<8x1xf32> to vector<8x32xf32>
    %119 = arith.mulf %109, %118 : vector<8x32xf32>
    %120 = vector.broadcast %101 : vector<1x32xf32> to vector<8x32xf32>
    %121 = arith.mulf %119, %120 : vector<8x32xf32>
    %122 = vector.broadcast %103 : vector<1x32xf32> to vector<8x32xf32>
    %123 = arith.addf %121, %122 : vector<8x32xf32>
    %c0_65 = arith.constant 0 : index
    %c0_66 = arith.constant 0 : index
    %c0_67 = arith.constant 0 : index
    %124 = vector.load %arg18[%c0_65, %c0_66, %c0_67] : memref<1x8x32xf32, #tpu.memory_space<vmem>>, vector<1x8x32xf32>
    %125 = vector.shape_cast %124 : vector<1x8x32xf32> to vector<8x32xf32>
    %126 = vector.shape_cast %123 : vector<8x32xf32> to vector<1x8x32xf32>
    tpu.vector_store %arg18[%c0_65, %c0_66, %c0_67], %126 {strides = array<i32>} : memref<1x8x32xf32, #tpu.memory_space<vmem>>, vector<1x8x32xf32>,
    %127 = arith.index_cast %4 : i32 to index
    %c0_68 = arith.constant 0 : index
    %128 = vector.load %arg19[%127, %c0_68] : memref<8x32xf32, #tpu.memory_space<vmem>>, vector<8x32xf32>
    tpu.vector_store %arg19[%127, %c0_68], %123 {strides = array<i32>} : memref<8x32xf32, #tpu.memory_space<vmem>>, vector<8x32xf32>,
    return
  }
  func.func @transform_0(%arg0: i32, %arg1: i32, %arg2: i32) -> (i32, i32, i32) {
    %c0_i32 = arith.constant 0 : i32
    %c0_i32_0 = arith.constant 0 : i32
    %c0_i32_1 = arith.constant 0 : i32
    return %arg0, %c0_i32, %c0_i32_0 : i32, i32, i32
  }
  func.func @transform_1(%arg0: i32, %arg1: i32, %arg2: i32) -> (i32, i32, i32, i32) {
    %c0_i32 = arith.constant 0 : i32
    %c0_i32_0 = arith.constant 0 : i32
    %c0_i32_1 = arith.constant 0 : i32
    return %arg0, %c0_i32, %arg2, %c0_i32_0 : i32, i32, i32, i32
  }
  func.func @transform_2(%arg0: i32, %arg1: i32, %arg2: i32) -> (i32, i32, i32) {
    %c0_i32 = arith.constant 0 : i32
    %c0_i32_0 = arith.constant 0 : i32
    %c0_i32_1 = arith.constant 0 : i32
    return %arg0, %c0_i32, %c0_i32_0 : i32, i32, i32
  }
  func.func @transform_3(%arg0: i32, %arg1: i32, %arg2: i32) -> (i32, i32, i32) {
    %c0_i32 = arith.constant 0 : i32
    %c0_i32_0 = arith.constant 0 : i32
    %c0_i32_1 = arith.constant 0 : i32
    return %arg1, %c0_i32, %c0_i32_0 : i32, i32, i32
  }
  func.func @transform_4(%arg0: i32, %arg1: i32, %arg2: i32) -> (i32, i32, i32) {
    %c0_i32 = arith.constant 0 : i32
    %c0_i32_0 = arith.constant 0 : i32
    %c0_i32_1 = arith.constant 0 : i32
    return %arg1, %c0_i32, %c0_i32_0 : i32, i32, i32
  }
  func.func @transform_5(%arg0: i32, %arg1: i32, %arg2: i32) -> (i32, i32, i32) {
    %c0_i32 = arith.constant 0 : i32
    %c0_i32_0 = arith.constant 0 : i32
    %c0_i32_1 = arith.constant 0 : i32
    return %arg1, %c0_i32, %c0_i32_0 : i32, i32, i32
  }
  func.func @transform_6(%arg0: i32, %arg1: i32, %arg2: i32) -> (i32, i32, i32) {
    %c0_i32 = arith.constant 0 : i32
    %c0_i32_0 = arith.constant 0 : i32
    %c0_i32_1 = arith.constant 0 : i32
    return %arg1, %c0_i32, %c0_i32_0 : i32, i32, i32
  }
  func.func @transform_7(%arg0: i32, %arg1: i32, %arg2: i32) -> (i32, i32, i32) {
    %c0_i32 = arith.constant 0 : i32
    %c0_i32_0 = arith.constant 0 : i32
    %c0_i32_1 = arith.constant 0 : i32
    return %arg1, %c0_i32, %c0_i32_0 : i32, i32, i32
  }
  func.func @transform_8(%arg0: i32, %arg1: i32, %arg2: i32) -> (i32, i32, i32) {
    %c0_i32 = arith.constant 0 : i32
    %c0_i32_0 = arith.constant 0 : i32
    %c0_i32_1 = arith.constant 0 : i32
    return %arg1, %c0_i32, %c0_i32_0 : i32, i32, i32
  }
  func.func @transform_9(%arg0: i32, %arg1: i32, %arg2: i32) -> (i32, i32, i32) {
    %c0_i32 = arith.constant 0 : i32
    %c0_i32_0 = arith.constant 0 : i32
    %c0_i32_1 = arith.constant 0 : i32
    return %arg1, %c0_i32, %c0_i32_0 : i32, i32, i32
  }
  func.func @transform_10(%arg0: i32, %arg1: i32, %arg2: i32) -> (i32, i32, i32) {
    %c0_i32 = arith.constant 0 : i32
    %c0_i32_0 = arith.constant 0 : i32
    %c0_i32_1 = arith.constant 0 : i32
    return %arg1, %c0_i32, %c0_i32_0 : i32, i32, i32
  }
  func.func @transform_11(%arg0: i32, %arg1: i32, %arg2: i32) -> (i32, i32, i32) {
    %c0_i32 = arith.constant 0 : i32
    %c0_i32_0 = arith.constant 0 : i32
    %c0_i32_1 = arith.constant 0 : i32
    return %arg1, %c0_i32, %c0_i32_0 : i32, i32, i32
  }
  func.func @transform_12(%arg0: i32, %arg1: i32, %arg2: i32) -> (i32, i32, i32) {
    %c0_i32 = arith.constant 0 : i32
    %c0_i32_0 = arith.constant 0 : i32
    %c0_i32_1 = arith.constant 0 : i32
    return %arg1, %c0_i32, %c0_i32_0 : i32, i32, i32
  }
  func.func @transform_13(%arg0: i32, %arg1: i32, %arg2: i32) -> (i32, i32, i32) {
    %c0_i32 = arith.constant 0 : i32
    %c0_i32_0 = arith.constant 0 : i32
    %c0_i32_1 = arith.constant 0 : i32
    return %arg1, %c0_i32, %c0_i32_0 : i32, i32, i32
  }
  func.func @transform_14(%arg0: i32, %arg1: i32, %arg2: i32) -> (i32, i32, i32) {
    %c0_i32 = arith.constant 0 : i32
    %c0_i32_0 = arith.constant 0 : i32
    %c0_i32_1 = arith.constant 0 : i32
    return %arg1, %c0_i32, %c0_i32_0 : i32, i32, i32
  }
  func.func @transform_15(%arg0: i32, %arg1: i32, %arg2: i32) -> (i32, i32, i32) {
    %c0_i32 = arith.constant 0 : i32
    %c0_i32_0 = arith.constant 0 : i32
    return %arg0, %arg2, %c0_i32 : i32, i32, i32
  }
}

</mosaic_0001>

<bundles_post_ra>
// kernel: tpu_custom_call.1
= control target key start
LH: loop header
LB: loop body
LE: loop exit
PB: predicated region body
PF: predicated region fallthrough
CT: control target
= control target key end

     0   :  { %s3325_s0 = inlined_call_operand.hbm [shape: f32[2,8,32], index: 0, kind: input, shape index: {}]   ;;  %s3326_s1 = inlined_call_operand.vmem [shape: bf16[2,4,8,8], index: 1, kind: input, shape index: {}]   ;;  %s3327_s2 = inlined_call_operand.vmem [shape: f32[2,1,8], index: 2, kind: input, shape index: {}]   ;;  %s3328_s3 = inlined_call_operand.vmem [shape: bf16[2,32,96], index: 3, kind: input, shape index: {}]   ;;  %s3329_s4 = inlined_call_operand.vmem [shape: f32[2,1,96], index: 4, kind: input, shape index: {}]   ;;  %s3330_s5 = inlined_call_operand.vmem [shape: bf16[2,32,32], index: 5, kind: input, shape index: {}]   ;;  %s3331_s6 = inlined_call_operand.vmem [shape: f32[2,1,32], index: 6, kind: input, shape index: {}]   ;;  %s3332_s7 = inlined_call_operand.vmem [shape: f32[2,1,32], index: 7, kind: input, shape index: {}]   ;;  %s3333_s8 = inlined_call_operand.hbm [shape: f32[2,1,32], index: 8, kind: input, shape index: {}]   ;;  %s3334_s9 = inlined_call_operand.hbm [shape: bf16[2,32,64], index: 9, kind: input, shape index: {}]   ;;  %s3335_s10 = inlined_call_operand.hbm [shape: f32[2,1,64], index: 10, kind: input, shape index: {}]   ;;  %s3336_s11 = inlined_call_operand.vmem [shape: bf16[2,64,32], index: 11, kind: input, shape index: {}]   ;;  %s3337_s12 = inlined_call_operand.vmem [shape: f32[2,1,32], index: 12, kind: input, shape index: {}]   ;;  %s3338_s13 = inlined_call_operand.vmem [shape: f32[2,1,32], index: 13, kind: input, shape index: {}]   ;;  %s3339_s14 = inlined_call_operand.vmem [shape: f32[2,1,32], index: 14, kind: input, shape index: {}]   ;;  %s3340_s15 = inlined_call_operand.hbm [shape: f32[2,8,32], index: 15, kind: output, shape index: {}]  }
   0x1   :  { %3369 = sst [smem:[#allocation35_spill]] %s3325_s0 }
   0x2   :  { %3370 = sst [smem:[#allocation36_spill]] %s3326_s1 }
   0x3   :  { %3371 = sst [smem:[#allocation37_spill]] %s3327_s2 }
   0x4   :  { %3372 = sst [smem:[#allocation38_spill]] %s3328_s3 }
   0x5   :  { %3373 = sst [smem:[#allocation39_spill]] %s3329_s4 }
   0x6   :  { %3374 = sst [smem:[#allocation40_spill]] %s3330_s5 }
   0x7   :  { %3375 = sst [smem:[#allocation41_spill]] %s3331_s6 }
   0x8   :  { %3376 = sst [smem:[#allocation42_spill]] %s3332_s7 }
   0x9   :  { %3377 = sst [smem:[#allocation43_spill]] %s3333_s8 }
   0xa   :  { %3378 = sst [smem:[#allocation44_spill]] %s3334_s9 }
   0xb   :  { %3379 = sst [smem:[#allocation45_spill]] %s3335_s10 }
   0xc   :  { %3380 = sst [smem:[#allocation46_spill]] %s3336_s11 }
   0xd   :  { %3381 = sst [smem:[#allocation47_spill]] %s3337_s12 }
   0xe   :  { %3382 = sst [smem:[#allocation48_spill]] %s3338_s13 }
   0xf   :  { %3383 = sst [smem:[#allocation49_spill]] %s3339_s14 }
  0x10   :  { %3384 = sst [smem:[#allocation50_spill]] %s3340_s15 }
  0x11   :  { %20 = vsyncpa [#allocation7], 0 }
  0x12   :  { %22 = vsyncpa [#allocation7 + $0x1], 0 }
  0x13   :  { %23 = vsyncpa [#allocation10], 0 }
  0x14   :  { %25 = vsyncpa [#allocation10 + $0x1], 0 }
  0x15   :  { %26 = vsyncpa [#allocation13], 0 }
  0x16   :  { %28 = vsyncpa [#allocation13 + $0x1], 0 }
  0x17   :  { %29 = vsyncpa [#allocation8], 0 }
  0x18   :  { %31 = vsyncpa [#allocation8 + $0x1], 0  ;;  %s2717_s18 = smov 0   ;;  %s2719_s19 = smov 0  }
  0x19   :  { %s2721_s20 = smov 0   ;;  %s2723_s21 = smov 0  }
  0x1a   :  { %s2725_s22 = smov 0   ;;  %s2727_s23 = smov 0  }
  0x1b   :  { %s2729_s24 = smov 0   ;;  %s2731_s25 = smov 0  }
  0x1c   :  { %s2733_s26 = smov 0   ;;  %s2735_s27 = smov 0  }
  0x1d   :  { %s2737_s28 = smov 0  }
  0x1e LB: > { %3385 = sst [smem:[#allocation19_spill]] %s2576_s19  ;;  %s2771_s29 = sadd.s32 4294967295, %s2612_s28   ;;  %s2612_s28 = sphi %s2737_s28, %s37_s28   ;;  %s2608_s27 = sphi %s2735_s27, %s3471_s27   ;;  %s2604_s26 = sphi %s2733_s26, %s3470_s26   ;;  %s2600_s25 = sphi %s2731_s25, %s3469_s25   ;;  %s2596_s24 = sphi %s2729_s24, %s3468_s24   ;;  %s2592_s23 = sphi %s2727_s23, %s3467_s23   ;;  %s2588_s22 = sphi %s2725_s22, %s3466_s22   ;;  %s2584_s21 = sphi %s2723_s21, %s3465_s21   ;;  %s2580_s20 = sphi %s2721_s20, %s3464_s20   ;;  %s2576_s19 = sphi %s2719_s19, %s3463_s19   ;;  %s2572_s18 = sphi %s2717_s18, %s3462_s18  }
  0x1f   : > { %3386 = sst [smem:[#allocation20_spill]] %s2580_s20  ;;  %s52_s30 = sadd.s32 1, %s2604_s26 }
  0x20   : > { %3387 = sst [smem:[#allocation21_spill]] %s2584_s21  ;;  %p2774_p0 = scmp.ge.s32.totalorder %s52_s30, 2 }
  0x21   : > { %3388 = sst [smem:[#allocation22_spill]] %s2588_s22  ;;  %p3347_p1 = scmp.eq.s32.totalorder %s2612_s28, 0 }
  0x22   : > { %3389 = sst [smem:[#allocation23_spill]] %s2592_s23  ;;  %p3346_p2 = scmp.eq.s32.totalorder %s2771_s29, 0 }
  0x23   : > { %3390 = sst [smem:[#allocation24_spill]] %s2596_s24  ;;  %s273_s17 = sadd.s32 1, %s2580_s20 }
  0x24   : > { %3391 = sst [smem:[#allocation25_spill]] %s2600_s25  ;;  %s3473_s30 = smov (%p2774_p0, %s52_s30), 0 }
  0x25   : > { %3392 = sst [smem:[#allocation26_spill]] %s2604_s26  ;;  %p280_p3 = scmp.ne.s32.totalorder %s2580_s20, %s2576_s19 }
  0x26   : > { %3393 = sst [smem:[#allocation27_spill]] %s2608_s27  ;;  %p286_p4 = scmp.ne.s32.totalorder %s2576_s19, %s2572_s18 }
  0x27   : > { %3394 = sst [smem:[#allocation28_spill]] %s2612_s28  ;;  %s270_s15 = ssub.s32 %s2604_s26, %s3473_s30 }
  0x28   : > { %s3395_s16 = scalar_select %p2774_p0, 1, 0 }
  0x29   : > { %3396 = sst [smem:[#allocation29_spill]] %s3473_s30  ;;  %p271_p5 = scmp.eq.s32.totalorder %s270_s15, 0 }
  0x2a   : > { %p282_p6 = por %p280_p3, %p3347_p1  ;;  %p2794_p7 = por %p286_p4, %p3346_p2 }
  0x2b   : > { %p3345_p8 = scmp.lt.s32.totalorder %s2612_s28, 4  ;;  %s563_s12 = sand.u32 1, %s2612_s28  }
  0x2c   : > { %s3397_s14 = scalar_select %p2794_p7, 1, 0 }
  0x2d   : > { %s2800_s13 = scalar_select %p271_p5, %s2580_s20, %s273_s17  }
  0x2e   : > { %s2804_s11 = sand.u32 1, %s2580_s20   ;;  %s3343_s18 = sshll.u32 %s2604_s26, 4 }
  0x2f   : > { %3398 = sst [smem:[#allocation30_spill]] %s2800_s13  ;;  %s566_s7 = scalar_lea.vmem [#allocation9], %s2804_s11 }
  0x30   : > { %s573_s30 = sshll.u32 %s566_s7, 4  ;;  %s3399_s8 = sld [smem:[#allocation43_spill]]  ;;  %s2815_s30 = int_to_ptr.vmem [resolvable:$true] %s573_s30 }
  0x31   : > { %p2819_p9 = pnand %p3345_p8, %p282_p6  ;;  %s2826_s7 = scalar_lea.sflag [#allocation10], %s563_s12 }
  0x33   : > { %s3400_s17 = scalar_select %p2819_p9, 1, 0 }
  0x34   : > { %p2832_p13 = pneg %p2819_p9 }
  0x36   : > { %s2813_s5 = scalar_lea.hbm %s3399_s8, %s3343_s18  ;;  %s2367_s4 = scalar_lea.hbm %s3399_s8, 32 }
  0x37   : > { %s2362_s6 = scalar_lea.hbm %s2813_s5, 16  ;;  %p2368_p5 = scmp.lt.u32.totalorder %s2813_s5, %s3399_s8 }
  0x38   : > { %p2363_p12 = scmp.ne.s32.totalorder %s2813_s5, %s2362_s6  ;;  %p2369_p6 = scmp.lt.u32.totalorder %s2367_s4, %s2362_s6 }
  0x39   : > { %p2371_p2 = scmp.lt.u32.totalorder %s2362_s6, %s2813_s5 }
  0x3a   : > { %p2365_p3 = pnand %p2832_p13, %p2363_p12  ;;  %p2370_p8 = por %p2369_p6, %p2368_p5 }
  0x3c   : > { %p2366_p4 = pneg %p2365_p3  ;;  %p2372_p1 = por %p2371_p2, %p2370_p8 }
  0x3e   : > { %p2373_p10 = pnand %p2372_p1, %p2366_p4 }
  0x40   : > { %2376 = shalt.err (!%p2373_p10)
}
  0x41   : > { %s2377_s12 = scalar_lea.vmem %s2815_s30, 16  ;;  %s2614_s20 = smov [#allocation9]  }
  0x42   : > { %p2378_p12 = scmp.ne.s32.totalorder %s2815_s30, %s2377_s12  ;;  %s2382_s18 = sshll.u32 %s2614_s20, 4  ;;  %s2383_s18 = int_to_ptr.vmem [resolvable:$false] %s2382_s18 }
  0x43   : > { %s2384_s3 = scalar_lea.vmem %s2383_s18, 32  ;;  %p2385_p7 = scmp.lt.s32.totalorder %s2815_s30, %s2383_s18 }
  0x44   : > { %p2380_p3 = pnand %p2378_p12, %p2832_p13  ;;  %p2386_p0 = scmp.lt.s32.totalorder %s2384_s3, %s2377_s12 }
  0x46   : > { %p2381_p11 = pneg %p2380_p3  ;;  %p2387_p5 = por %p2386_p0, %p2385_p7 }
  0x48   : > { %p2388_p6 = pnand %p2387_p5, %p2381_p11 }
  0x4a   : > { %2391 = shalt.err (!%p2388_p6)
}
  0x4b   : > { %2211 = dma.hbm_to_vmem [thread:$0]  (!%p2819_p9), %s2813_s5, 16, %s2815_s30, %s2826_s7  }
  0x4c   : > { %p3402_p0 = scmp.lt.s32.totalorder %s2612_s28, 5  ;;  %p3403_p1 = scmp.ge.s32.totalorder %s2612_s28, 1 }
  0x4d   : > { %s2007_s13 = sadd.s32 4294967294, %s2612_s28   ;;  %s56_s6 = sadd.s32 1, %s2608_s27 }
  0x4e   : > { %p2860_p2 = pnand %p3403_p1, %p3402_p0  ;;  %p3405_p7 = scmp.ne.s32.totalorder %s3395_s16, 0 }
  0x4f   : > { %s63_s12 = sadd.s32 1, %s2592_s23  ;;  %p70_p8 = scmp.ne.s32.totalorder %s2592_s23, %s2588_s22 }
  0x50   : > { %s3404_s4 = scalar_select %p2860_p2, 1, 0 }
  0x51   : > { %s3475_s6 = smov (!%p3405_p7, %s56_s6), %s2608_s27  ;;  %p76_p11 = scmp.ne.s32.totalorder %s2588_s22, %s2584_s21 }
  0x52   : > { %p58_p10 = scmp.ge.s32.totalorder %s3475_s6, 2  ;;  %p3406_p4 = scmp.eq.s32.totalorder %s2612_s28, 0 }
  0x53   : > { %p468_p3 = scmp.eq.s32.totalorder %s2771_s29, 3  ;;  %p3409_p5 = scmp.eq.s32.totalorder %s2771_s29, 0 }
  0x54   : > { %p2876_p12 = por %p3406_p4, %p70_p8  ;;  %s3477_s6 = smov (%p58_p10, %s3475_s6), 0 }
  0x55   : > { %3408 = sst [smem:[#allocation31_spill]] %s3477_s6  ;;  %p2885_p6 = por %p3409_p5, %p76_p11 }
  0x56   : > { %p2889_p0 = por %p468_p3, %p70_p8  ;;  %s60_s20 = ssub.s32 %s2608_s27, %s3477_s6 }
  0x57   : > { %s3410_s30 = scalar_select %p2885_p6, 1, 0 }
  0x58   : > { %s3411_s16 = scalar_select %p2889_p0, 1, 0 }
  0x59   : > { %p474_p1 = scmp.eq.s32.totalorder %s2007_s13, 3  ;;  %p61_p7 = scmp.eq.s32.totalorder %s60_s20, 0 }
  0x5a   : > { %3412 = sst [smem:[#allocation32_spill]] %s3411_s16  ;;  %s494_s18 = sand.u32 1, %s2592_s23  }
  0x5b   : > { %p2896_p4 = por %p474_p1, %p76_p11  ;;  %s2010_s21 = sshll.u32 %s494_s18, 3 }
  0x5c   : > { %s2901_s8 = scalar_select %p61_p7, %s2592_s23, %s63_s12  }
  0x5d   : > { %s3413_s3 = scalar_select %p2896_p4, 1, 0 }
  0x5e   : > { %3415 = sst [smem:[#allocation34_spill]] %s2901_s8  ;;  %s2011_s1 = sshll.u32 %s2608_s27, 7 }
  0x5f   : > { %3414 = sst [smem:[#allocation33_spill]] %s3413_s3  ;;  %s3416_s0 = sld [smem:[#allocation35_spill]] }
  0x60   : > { %s498_s13 = scalar_lea.vmem [#allocation6], %s2010_s21  ;;  %p3417_p8 = scmp.lt.s32.totalorder %s2612_s28, 4 }
  0x61   : > { %s505_s20 = sshll.u32 %s498_s13, 4  ;;  %s2066_s12 = sshll.u32 %s2604_s26, 8  ;;  %s2917_s20 = int_to_ptr.vmem [resolvable:$true] %s505_s20 }
  0x62   : > { %p2913_p10 = pnand %p3417_p8, %p2876_p12  ;;  %s495_s2 = scalar_lea.sflag [#allocation7], %s494_s18 }
  0x64   : > { %p2394_p3 = pneg %p2913_p10 }
  0x65   : > { %s2907_s25 = scalar_lea.hbm %s3416_s0, %s2011_s1  ;;  %s2397_s5 = scalar_lea.hbm %s3416_s0, 256 }
  0x66   : > { %s2392_s1 = scalar_lea.hbm %s2907_s25, 128  ;;  %p2398_p12 = scmp.lt.u32.totalorder %s2907_s25, %s3416_s0 }
  0x67   : > { %p2393_p11 = scmp.ne.s32.totalorder %s2907_s25, %s2392_s1  ;;  %p2399_p7 = scmp.lt.u32.totalorder %s2397_s5, %s2392_s1 }
  0x68   : > { %p2401_p4 = scmp.lt.u32.totalorder %s2392_s1, %s2907_s25 }
  0x69   : > { %p2395_p5 = pnand %p2394_p3, %p2393_p11  ;;  %p2400_p8 = por %p2399_p7, %p2398_p12 }
  0x6b   : > { %p2396_p1 = pneg %p2395_p5  ;;  %p2402_p0 = por %p2401_p4, %p2400_p8 }
  0x6d   : > { %p2403_p6 = pnand %p2402_p0, %p2396_p1 }
  0x6f   : > { %2406 = shalt.err (!%p2403_p6)
}
  0x70   : > { %s2407_s18 = scalar_lea.vmem %s2917_s20, 128  ;;  %s2615_s21 = smov [#allocation6]  }
  0x71   : > { %p2408_p11 = scmp.ne.s32.totalorder %s2917_s20, %s2407_s18  ;;  %s2412_s24 = sshll.u32 %s2615_s21, 4  ;;  %s2413_s24 = int_to_ptr.vmem [resolvable:$false] %s2412_s24 }
  0x72   : > { %s2414_s27 = scalar_lea.vmem %s2413_s24, 256  ;;  %p2415_p9 = scmp.lt.s32.totalorder %s2917_s20, %s2413_s24 }
  0x73   : > { %p2410_p5 = pnand %p2408_p11, %p2394_p3  ;;  %p2416_p12 = scmp.lt.s32.totalorder %s2414_s27, %s2407_s18 }
  0x75   : > { %p2411_p2 = pneg %p2410_p5  ;;  %p2417_p7 = por %p2416_p12, %p2415_p9 }
  0x77   : > { %p2418_p4 = pnand %p2417_p7, %p2411_p2 }
  0x79   : > { %2421 = shalt.err (!%p2418_p4)
}
  0x7a   : > { %2208 = dma.hbm_to_vmem [thread:$0]  (!%p2913_p10), %s2907_s25, 128, %s2917_s20, %s495_s2  }
  0x7b   : > { %s3419_s9 = sld [smem:[#allocation44_spill]]  ;;  %s3420_s21 = sshll.u32 %s2804_s11, 4 }
  0x7c   : > { %s584_s18 = scalar_lea.vmem [#allocation11], %s3420_s21 }
  0x7d   : > { %s591_s24 = sshll.u32 %s584_s18, 4  ;;  %s2954_s24 = int_to_ptr.vmem [resolvable:$true] %s591_s24 }
  0x81   : > { %s2950_s13 = scalar_lea.hbm %s3419_s9, %s2066_s12  ;;  %s2427_s2 = scalar_lea.hbm %s3419_s9, 512 }
  0x82   : > { %s2422_s6 = scalar_lea.hbm %s2950_s13, 256  ;;  %p2428_p0 = scmp.lt.u32.totalorder %s2950_s13, %s3419_s9 }
  0x83   : > { %p2423_p9 = scmp.ne.s32.totalorder %s2950_s13, %s2422_s6  ;;  %p2429_p10 = scmp.lt.u32.totalorder %s2427_s2, %s2422_s6 }
  0x84   : > { %p2431_p1 = scmp.lt.u32.totalorder %s2422_s6, %s2950_s13 }
  0x85   : > { %p2425_p2 = pnand %p2423_p9, %p2832_p13  ;;  %p2430_p3 = por %p2429_p10, %p2428_p0 }
  0x87   : > { %p2426_p6 = pneg %p2425_p2  ;;  %p2432_p8 = por %p2431_p1, %p2430_p3 }
  0x89   : > { %p2433_p11 = pnand %p2432_p8, %p2426_p6 }
  0x8b   : > { %2436 = shalt.err (!%p2433_p11)
}
  0x8c   : > { %s2437_s1 = scalar_lea.vmem %s2954_s24, 256  ;;  %s2616_s5 = smov [#allocation11]  }
  0x8d   : > { %p2438_p5 = scmp.ne.s32.totalorder %s2954_s24, %s2437_s1  ;;  %s2442_s21 = sshll.u32 %s2616_s5, 4  ;;  %s2443_s21 = int_to_ptr.vmem [resolvable:$false] %s2442_s21 }
  0x8e   : > { %s2444_s18 = scalar_lea.vmem %s2443_s21, 512  ;;  %p2445_p4 = scmp.lt.s32.totalorder %s2954_s24, %s2443_s21 }
  0x8f   : > { %p2440_p12 = pnand %p2438_p5, %p2832_p13  ;;  %p2446_p9 = scmp.lt.s32.totalorder %s2444_s18, %s2437_s1 }
  0x91   : > { %p2441_p7 = pneg %p2440_p12  ;;  %p2447_p2 = por %p2446_p9, %p2445_p4 }
  0x93   : > { %p2448_p0 = pnand %p2447_p2, %p2441_p7 }
  0x95   : > { %2451 = shalt.err (!%p2448_p0)
}
  0x96   : > { %s2617_s6 = smov 64   ;;  %s2618_s25 = smov 4  }
  0x97   : > { %p3421_p6 = scmp.ne.s32.totalorder %s3400_s17, 0  ;;  %s3422_s20 = sshll.u32 %s2604_s26, 4 }
  0x98   : > { %s3423_s10 = sld [smem:[#allocation45_spill]]  ;;  %s604_s1 = scalar_lea.vmem [#allocation12], %s2804_s11 }
  0x99   : > { %2214 = dma.hbm_to_vmem [thread:$0]  (!%p3421_p6), %s2950_s13, 256, %s2954_s24, %s2826_s7, %s2617_s6, %s2617_s6, %s2618_s25  }
  0x9a   : > { %s611_s5 = sshll.u32 %s604_s1, 4  ;;  %s602_s21 = scalar_lea.sflag [#allocation13], %s2804_s11  ;;  %s612_s5 = int_to_ptr.vmem [resolvable:$true] %s611_s5 }
  0x9e   : > { %s2983_s27 = scalar_lea.hbm %s3423_s10, %s3422_s20  ;;  %s2457_s24 = scalar_lea.hbm %s3423_s10, 32 }
  0x9f   : > { %s2452_s18 = scalar_lea.hbm %s2983_s27, 16  ;;  %p2458_p8 = scmp.lt.u32.totalorder %s2983_s27, %s3423_s10 }
  0xa0   : > { %p2453_p10 = scmp.ne.s32.totalorder %s2983_s27, %s2452_s18  ;;  %p2459_p11 = scmp.lt.u32.totalorder %s2457_s24, %s2452_s18 }
  0xa1   : > { %p2461_p12 = scmp.lt.u32.totalorder %s2452_s18, %s2983_s27 }
  0xa2   : > { %p2455_p3 = pnand %p2453_p10, %p2832_p13  ;;  %p2460_p5 = por %p2459_p11, %p2458_p8 }
  0xa4   : > { %p2456_p1 = pneg %p2455_p3  ;;  %p2462_p7 = por %p2461_p12, %p2460_p5 }
  0xa6   : > { %p2463_p4 = pnand %p2462_p7, %p2456_p1 }
  0xa8   : > { %2466 = shalt.err (!%p2463_p4)
}
  0xa9   : > { %s2467_s11 = scalar_lea.vmem %s612_s5, 16  ;;  %s2619_s20 = smov [#allocation12]  }
  0xaa   : > { %p2468_p9 = scmp.ne.s32.totalorder %s612_s5, %s2467_s11  ;;  %s2472_s2 = sshll.u32 %s2619_s20, 4  ;;  %s2473_s2 = int_to_ptr.vmem [resolvable:$false] %s2472_s2 }
  0xab   : > { %s2474_s12 = scalar_lea.vmem %s2473_s2, 32  ;;  %p2475_p10 = scmp.lt.s32.totalorder %s612_s5, %s2473_s2 }
  0xac   : > { %p2470_p2 = pnand %p2468_p9, %p2832_p13  ;;  %p2476_p3 = scmp.lt.s32.totalorder %s2474_s12, %s2467_s11 }
  0xae   : > { %p2471_p0 = pneg %p2470_p2  ;;  %p2477_p6 = por %p2476_p3, %p2475_p10 }
  0xb0   : > { %p2478_p8 = pnand %p2477_p6, %p2471_p0 }
  0xb2   : > { %2481 = shalt.err (!%p2478_p8)
}
  0xb3   : > { %p3424_p11 = scmp.ne.s32.totalorder %s3400_s17, 0  ;;  %p3425_p1 = scmp.ne.s32.totalorder %s3404_s4, 0 }
  0xb4   : > { %s3007_s15 = sand.u32 (!%p3425_p1), 1, %s2588_s22   ;;  %p3426_p13 = scmp.ne.s32.totalorder (!%p3425_p1), %s3410_s30, 0 }
  0xb5   : > { %2217 = dma.hbm_to_vmem [thread:$0]  (!%p3424_p11), %s2983_s27, 16, %s612_s5, %s602_s21  }
  0xb6   : > { %646 = sbr.rel (%p3425_p1) target bundleno = 2759 (0xac7), region = 80  ;;  %s3359_s1 = sshll.u32 (!%p3425_p1), %s3007_s15, 3 }
  0xb7   : > { %s649_s18 = scalar_lea.sflag (!%p3425_p1), [#allocation7], %s3007_s15  ;;  %s3013_s7 = scalar_lea.vmem (!%p3425_p1), [#allocation6], %s3359_s1 }
  0xbd   : > { %2555 = dma.done.wait (%p3426_p13), %s649_s18, 128  }
  0xbe   : > { %2557 = vsyncadd (%p3426_p13), %s649_s18, 4294967168  ;;  %s657_s17 = sand.u32 1, %s2771_s29   ;;  %s3021_s4 = sand.u32 1, %s2576_s19  }
  0xbf   : > { %s658_s27 = scalar_lea.sflag [#allocation10], %s657_s17  ;;  %p3427_p6 = scmp.ne.s32.totalorder %s3397_s14, 0 }
  0xc1   : > { %2559 = dma.done.wait (%p3427_p6), %s658_s27, 272  }
  0xc2   : > { %2561 = vsyncadd (%p3427_p6), %s658_s27, 4294967024  ;;  %s2019_s30 = sshll.u32 %s3021_s4, 4  ;;  %s675_s13 = scalar_lea.sflag [#allocation13], %s3021_s4 }
  0xc3   : > { %s3029_s21 = scalar_lea.vmem [#allocation11], %s2019_s30 }
  0xc4   : > { %2563 = dma.done.wait (%p3427_p6), %s675_s13, 16  }
  0xc5   : > { %2565 = vsyncadd (%p3427_p6), %s675_s13, 4294967280  ;;  %s3428_s29 = sld [smem:[#allocation25_spill]]  ;;  %s3429_s6 = sld [smem:[#allocation24_spill]] }
  0xc6   : > { %s3431_s27 = sld [smem:[#allocation36_spill]]  ;;  %s3432_s1 = sld [smem:[#allocation38_spill]] }
  0xc7   : > { %s3434_s19 = sld [smem:[#allocation40_spill]]  ;;  %s3437_s24 = sld [smem:[#allocation46_spill]] }
  0xc8   : > { %s3438_s26 = sld [smem:[#allocation47_spill]]  ;;  %s3440_s2 = sld [smem:[#allocation49_spill]] }
  0xcb   : > { %p781_p5 = scmp.lt.s32.totalorder %s3428_s29, 1  ;;  %p792_p12 = scmp.lt.s32.totalorder %s3429_s6, 1 }
  0xcc   : > { %p2029_p7 = scmp.ne.s32.totalorder %s3429_s6, 0 }
  0xcd   : > { %s3479_s29 = smov (!%p781_p5, %s3428_s29), 1  ;;  %v834_v0 = vld [vmem:[%s3013_s7] sm:$0xff] (!%p2029_p7)  ;;  %vm835_vm0 = vcmask (!%p2029_p7), 261120  }
  0xce   : > { %s3043_s25 = scalar_select %p792_p12, %s3429_s6, 1 }
  0xcf   : > { %s2067_s14 = sshll.u32 %s3479_s29, 4  ;;  %836 = vst.msk [vmem:[#allocation2] sm:$0xff] (!%p2029_p7), %vm835_vm0, %v834_v0 }
  0xd0   : > { %s3053_s30 = scalar_lea.vmem %s3431_s27, %s2067_s14  ;;  %s2068_s13 = sshll.u32 %s3043_s25, 4 }
  0xd1   : > { %s796_s0 = scalar_lea.vmem %s3432_s1, %s2068_s13  ;;  %s3066_s3 = scalar_lea.vmem %s3434_s19, %s2068_s13 }
  0xd2   : > { %s3436_s27 = sld [smem:[#allocation42_spill]]  ;;  %s2070_s28 = sshll.u32 %s3043_s25, 5 }
  0xd3   : > { %s3080_s16 = scalar_lea.vmem %s3437_s24, %s2070_s28  ;;  %s818_s22 = scalar_lea.vmem %s3438_s26, %s3043_s25 }
  0xd4   : > { %s3439_s13 = sld [smem:[#allocation48_spill]]  ;;  %s824_s18 = scalar_lea.vmem %s3440_s2, %s3043_s25 }
  0xd5   : > { %s3441_s14 = sshll.u32 %s3007_s15, 3  ;;  %833 = sbr.rel (%p2029_p7) target bundleno = 220 (0xdc), region = 104 }
  0xd6   : > { %s3096_s17 = scalar_lea.vmem [#allocation14], %s3441_s14 }
  0xd8   : > { %s810_s12 = scalar_lea.vmem %s3436_s27, %s3043_s25 }
  0xda   : > { %s821_s8 = scalar_lea.vmem %s3439_s13, %s3043_s25 }
  0xdc PF: > { %v2330_v1 = vld [vmem:[%s796_s0] sm:$0xff]   ;;  %v2620_v2 = vmov 0.0   ;;  %v2331_v3 = vld [vmem:[%s796_s0 + $0x8] sm:$0xff]   ;;  %vm2621_vm1 = vmmov 0   ;;  %vm862_vm2 = vcmask 261120   ;;  %s3442_s7 = sld [smem:[#allocation39_spill]] }
  0xdd   : > { %2111 = vmatprep.subr.bf16.mxu0 %v2620_v2  ;;  %2119 = vmatprep.subr.bf16.mxu1 %v2620_v2  ;;  %v3104_v4 = vld [vmem:[#allocation2] sm:$0xff]  ;;  %vm907_vm3 = vcmask 60416   ;;  %s2622_s27 = smov 80   ;;  %s2623_s5 = smov 96   ;;  %vm988_vm4 = vcmask 64512   ;;  %v2080_v40 = vld [vmem:[%s3053_s30 + $0x8] sm:$0xff]  }
  0xde   : > { %2112 = vmatpush3.bf16.msra.mxu0 %v2330_v1  ;;  %2115 = vmatprep.mubr.msk.bf16.mxu0 %vm2621_vm1, %v2620_v2  ;;  %v838_v5 = vpack.c.bf16 %v3104_v4, %v3104_v4  ;;  %s2624_s1 = smov 120   ;;  %s2625_s24 = smov 88   ;;  %v2073_v32 = vld [vmem:[%s3053_s30] sm:$0xff]   ;;  %v2078_v47 = vunpack.c.l.bf16 %v2080_v40  ;;  %v2079_v55 = vunpack.c.h.bf16 %v2080_v40  ;;  %vm1239_vm5 = vcmask 1043456  }
  0xdf   : > { %2113 = vmatprep.subr.bf16.mxu0 %v2620_v2  ;;  %2121 = vmatprep.mubr.msk.bf16.mxu1 %vm2621_vm1, %v2620_v2  ;;  %s2626_s9 = smov 112   ;;  %s2627_s10 = smov 72   ;;  %v2074_v33 = vunpack.c.l.bf16 %v2073_v32  ;;  %v2075_v38 = vunpack.c.h.bf16 %v2073_v32  ;;  %vm1434_vm6 = vcmask 130048   ;;  %vm1436_vm7 = vcmask 195584  }
  0xe0   : > { %s2628_s26 = smov 104   ;;  %s3444_s13 = sld [smem:[#allocation37_spill]]  ;;  %vm1649_vm8 = vcmask 523264  }
  0xe1   : > { %s2630_s30 = smov 64   ;;  %s2631_s20 = smov 48  }
  0xe2   : > { %2114 = vmatpush3.bf16.msra.mxu0 %v2331_v3  ;;  %s3443_s6 = scalar_lea.vmem %s3442_s7, %s3043_s25  ;;  %s2632_s2 = smov 40  }
  0xe3   : > { %2125 = vmatprep.subr.bf16.mxu0 %v2620_v2  ;;  %v2030_v6 = vld [vmem:[%s3443_s6] ss:$0 sm:$0xff]  ;;  %s2633_s14 = smov 8   ;;  %s2634_s0 = smov 24  }
  0xe4   : > { %s2635_s28 = smov 16   ;;  %s3446_s6 = sld [smem:[#allocation41_spill]] }
  0xe5   : > { %2116 = vmatmul.mubr.msk.bf16.vlgmr.msra.gmra.mrb[0].mxu0 %vm862_vm2, %v838_v5 }
  0xe6   : > { %2127 = vmatprep.mubr.msk.bf16.mxu0 %vm2621_vm1, %v2620_v2  ;;  %s3445_s11 = scalar_lea.vmem %s3444_s13, %s3479_s29  ;;  %s2629_s29 = smov 56  }
  0xe7   : > { %v2039_v35 = vld [vmem:[%s3445_s11] ss:$0 sm:$0xff] }
 0x1b8   : > { %v900_v7 = vpop.f32.mrb[0].mxu0 }
 0x1b9   : > { %v901_v8 = vadd.f32 %v2030_v6, %v900_v7  ;;  %v2117_v9 = vpop.f32.mrb[1].mxu0 }
 0x1ba   : > { %v903_v10 = vpop.f32.mrb[2].mxu0 }
 0x1bb   : > { %v3120_v11 = vpack.c.bf16 %v901_v8, %v901_v8  ;;  %v2118_v12 = vpop.f32.mrb[3].mxu0 }
 0x1bd   : > { %940 = vrot.lane.b32.xlu1 %v3120_v11, %s2622_s27  ;;  %912 = vrot.lane.b32.xlu0 %v3120_v11, %s2623_s5  ;;  %908 = vst.msk [vmem:[#allocation3] sm:$0xf] %vm907_vm3, %v3120_v11  ;;  %s3447_s27 = scalar_lea.vmem %s3446_s6, %s3043_s25 }
 0x1c1   : > { %920 = vrot.lane.b32.xlu1 %v3120_v11, %s2624_s1  ;;  %925 = vrot.lane.b32.xlu0 %v3120_v11, %s2625_s24 }
 0x1c4   : > { %v972_v25 = vld [vmem:[#allocation3] sm:$0xf] }
 0x1c5   : > { %935 = vrot.lane.b32.xlu1 %v3120_v11, %s2626_s9  ;;  %955 = vrot.lane.b32.xlu0 %v3120_v11, %s2627_s10  ;;  %s3449_s9 = scalar_lea.vmem [#allocation9], %s3021_s4 }
 0x1c9   : > { %950 = vrot.lane.b32.xlu0 %v3120_v11, %s2628_s26 }
 0x22f   : > { %v941_v13 = vpop.permute.xlu1 %940  ;;  %v913_v14 = vpop.permute.xlu0 %912 }
 0x230   : > { %944 = vst.msk [vmem:[#allocation4 + $0x8] sm:$0xf] %vm907_vm3, %v941_v13  ;;  %915 = vst.msk [vmem:[#allocation4] sm:$0xf] %vm907_vm3, %v913_v14 }
 0x233   : > { %v921_v15 = vpop.permute.xlu1 %920  ;;  %v926_v16 = vpop.permute.xlu0 %925 }
 0x234   : > { %924 = vst.msk [vmem:[#allocation3 + $0x4] sm:$0xf] %vm907_vm3, %v921_v15  ;;  %929 = vst.msk [vmem:[#allocation4 + $0x4] sm:$0xf] %vm907_vm3, %v926_v16 }
 0x237   : > { %v936_v17 = vpop.permute.xlu1 %935  ;;  %v956_v18 = vpop.permute.xlu0 %955  ;;  %v976_v19 = vld [vmem:[#allocation4] sm:$0xf]  ;;  %v978_v24 = vld [vmem:[#allocation4 + $0x8] sm:$0xf] }
 0x238   : > { %939 = vst.msk [vmem:[#allocation3 + $0x8] sm:$0xf] %vm907_vm3, %v936_v17  ;;  %959 = vst.msk [vmem:[#allocation4 + $0xc] sm:$0xf] %vm907_vm3, %v956_v18  ;;  %v993_v20 = vsel %vm988_vm4, %v976_v19, 0  ;;  %v1085_v26 = vsel %vm988_vm4, %v978_v24, 0 }
 0x239   : > { %2120 = vmatpush3.bf16.xpose.msra.mxu1 %v993_v20 }
 0x23a   : > { %2131 = vmatprep.subr.bf16.mxu1 %v2620_v2 }
 0x23b   : > { %v951_v21 = vpop.permute.xlu0 %950  ;;  %v977_v22 = vld [vmem:[#allocation4 + $0x4] sm:$0xf]  ;;  %v973_v28 = vld [vmem:[#allocation3 + $0x4] sm:$0xf] }
 0x23c   : > { %954 = vst.msk [vmem:[#allocation3 + $0xc] sm:$0xf] %vm907_vm3, %v951_v21  ;;  %v1039_v23 = vsel %vm988_vm4, %v977_v22, 0 }
 0x23d   : > { %2126 = vmatpush3.bf16.xpose.msra.mxu0 %v1039_v23 }
 0x23e   : > { %2137 = vmatprep.subr.bf16.mxu0 %v2620_v2 }
 0x23f   : > { %v979_v27 = vld [vmem:[#allocation4 + $0xc] sm:$0xf]  ;;  %v974_v30 = vld [vmem:[#allocation3 + $0x8] sm:$0xf] }
 0x240   : > { %2122 = vmatmul.mubr.msk.bf16.vlgmr.msra.gmra.mrb[0].mxu1 %vm988_vm4, %v972_v25  ;;  %v1131_v29 = vsel %vm988_vm4, %v979_v27, 0 }
 0x241   : > { %2132 = vmatpush3.bf16.xpose.msra.mxu1 %v1085_v26  ;;  %2133 = vmatprep.mubr.msk.bf16.mxu1 %vm2621_vm1, %v2620_v2 }
 0x242   : > { %2143 = vmatprep.subr.bf16.mxu1 %v2620_v2 }
 0x243   : > { %v975_v31 = vld [vmem:[#allocation3 + $0xc] sm:$0xf] }
 0x244   : > { %2128 = vmatmul.mubr.msk.bf16.vlgmr.msra.gmra.mrb[4].mxu0 %vm988_vm4, %v973_v28 }
 0x245   : > { %2138 = vmatpush3.bf16.xpose.msra.mxu0 %v1131_v29  ;;  %2139 = vmatprep.mubr.msk.bf16.mxu0 %vm2621_vm1, %v2620_v2 }
 0x246   : > { %2149 = vmatprep.subr.bf16.mxu0 %v2620_v2 }
 0x248   : > { %2134 = vmatmul.mubr.msk.bf16.vlgmr.msra.gmra.mrb[4].mxu1 %vm988_vm4, %v974_v30 }
 0x249   : > { %2145 = vmatprep.mubr.msk.bf16.mxu1 %vm2621_vm1, %v2620_v2 }
 0x24c   : > { %2140 = vmatmul.mubr.msk.bf16.vlgmr.msra.gmra.mrb[8].mxu0 %vm988_vm4, %v975_v31 }
 0x24d   : > { %2151 = vmatprep.mubr.msk.bf16.mxu0 %vm2621_vm1, %v2620_v2 }
 0x313   : > { %v1029_v34 = vpop.f32.mrb[0].mxu1 }
 0x314   : > { %v1030_v36 = vadd.f32 %v2074_v33, %v1029_v34  ;;  %v2123_v37 = vpop.f32.mrb[1].mxu1 }
 0x315   : > { %v1032_v39 = vpop.f32.mrb[2].mxu1 }
 0x316   : > { %v2124_v41 = vpop.f32.mrb[3].mxu1  ;;  %v1180_v42 = vadd.f32 %v2039_v35, %v1030_v36 }
 0x317   : > { %v1075_v43 = vpop.f32.mrb[4].mxu0 }
 0x318   : > { %v1076_v44 = vadd.f32 %v2075_v38, %v1075_v43  ;;  %v2129_v45 = vpop.f32.mrb[5].mxu0  ;;  %v1184_v46 = vsel %vm988_vm4, %v1180_v42, -inf }
 0x319   : > { %1185 = vmax.xlane.f32.xlu1 %v1184_v46  ;;  %v1078_v48 = vpop.f32.mrb[6].mxu0 }
 0x31a   : > { %v2130_v49 = vpop.f32.mrb[7].mxu0  ;;  %v1181_v50 = vadd.f32 %v2039_v35, %v1076_v44 }
 0x31b   : > { %v1121_v51 = vpop.f32.mrb[4].mxu1 }
 0x31c   : > { %v1122_v52 = vadd.f32 %v2078_v47, %v1121_v51  ;;  %v2135_v53 = vpop.f32.mrb[5].mxu1  ;;  %v1187_v54 = vsel %vm988_vm4, %v1181_v50, -inf }
 0x31d   : > { %v1124_v56 = vpop.f32.mrb[6].mxu1  ;;  %1188 = vmax.xlane.f32.xlu0 %v1187_v54  ;;  %v2332_v53 = vld [vmem:[%s3066_s3] sm:$0xff]  }
 0x31e   : > { %v2136_v57 = vpop.f32.mrb[7].mxu1  ;;  %v1182_v58 = vadd.f32 %v2039_v35, %v1122_v52 }
 0x31f   : > { %v1167_v59 = vpop.f32.mrb[8].mxu0 }
 0x320   : > { %v1168_v60 = vadd.f32 %v2079_v55, %v1167_v59  ;;  %v2141_v61 = vpop.f32.mrb[9].mxu0  ;;  %v1190_v62 = vsel %vm988_vm4, %v1182_v58, -inf  ;;  %v2333_v55 = vld [vmem:[%s3066_s3 + $0x8] sm:$0xff]  }
 0x321   : > { %1191 = vmax.xlane.f32.xlu0 %v1190_v62  ;;  %v1170_v63 = vpop.f32.mrb[10].mxu0 }
 0x322   : > { %v2142_v0 = vpop.f32.mrb[11].mxu0  ;;  %v1183_v1 = vadd.f32 %v2039_v35, %v1168_v60 }
 0x324   : > { %v1193_v3 = vsel %vm988_vm4, %v1183_v1, -inf }
 0x325   : > { %1194 = vmax.xlane.f32.xlu1 %v1193_v3 }
 0x336   : > { %930 = vrot.lane.b32.xlu1 %v3120_v11, %s2629_s29 }
 0x337   : > { %916 = vrot.lane.b32.xlu0 %v3120_v11, %s2630_s30 }
 0x3a6   : > { %v1186_v5 = vpop.xlane.xlu1 %1185 }
 0x3a7   : > { %v1196_v6 = vsub.f32 %v1180_v42, %v1186_v5 }
 0x3a9   : > { %v1200_v7 = vmul.f32 1.442695, %v1196_v6 }
 0x3aa   : > { %v1189_v8 = vpop.xlane.xlu0 %1188 }
 0x3ab   : > { %2340 = vpow2.f32 %v1200_v7  ;;  %v1197_v9 = vsub.f32 %v1181_v50, %v1189_v8 }
 0x3ad   : > { %v1202_v10 = vmul.f32 1.442695, %v1197_v9 }
 0x3ae   : > { %v1192_v12 = vpop.xlane.xlu0 %1191 }
 0x3af   : > { %2342 = vpow2.f32 %v1202_v10  ;;  %v1198_v13 = vsub.f32 %v1182_v58, %v1192_v12 }
 0x3b1   : > { %v1204_v14 = vmul.f32 1.442695, %v1198_v13 }
 0x3b2   : > { %v917_v15 = vpop.permute.xlu0 %916  ;;  %v1195_v16 = vpop.xlane.xlu1 %1194 }
 0x3b3   : > { %2344 = vpow2.f32 %v1204_v14  ;;  %919 = vst.msk [vmem:[#allocation5] sm:$0xf] %vm907_vm3, %v917_v15  ;;  %v1199_v17 = vsub.f32 %v1183_v1, %v1195_v16 }
 0x3b5   : > { %v2341_v18 = vpop.eup %2340  ;;  %v1206_v19 = vmul.f32 1.442695, %v1199_v17  ;;  %v2044_v17 = vld [vmem:[%s3447_s27] ss:$0 sm:$0xff] }
 0x3b6   : > { %v931_v20 = vpop.permute.xlu1 %930  ;;  %v1208_v21 = vsel %vm988_vm4, %v2341_v18, 0.0 }
 0x3b7   : > { %2346 = vpow2.f32 %v1206_v19  ;;  %934 = vst.msk [vmem:[#allocation5 + $0x4] sm:$0xf] %vm907_vm3, %v931_v20  ;;  %1209 = vadd.xlane.f32.xlu0 %v1208_v21 }
 0x3b9   : > { %v2343_v22 = vpop.eup %2342 }
 0x3ba   : > { %v1211_v23 = vsel %vm988_vm4, %v2343_v22, 0.0  ;;  %v1232_v24 = vld [vmem:[#allocation5] sm:$0xf] }
 0x3bb   : > { %1212 = vadd.xlane.f32.xlu1 %v1211_v23  ;;  %v1241_v25 = vsel %vm1239_vm5, %v1232_v24, 0 }
 0x3bc   : > { %2144 = vmatpush3.bf16.msra.mxu1 %v1241_v25 }
 0x3bd   : > { %v2345_v26 = vpop.eup %2344  ;;  %2155 = vmatprep.subr.bf16.mxu1 %v2620_v2 }
 0x3be   : > { %v1214_v27 = vsel %vm988_vm4, %v2345_v26, 0.0  ;;  %v1233_v28 = vld [vmem:[#allocation5 + $0x4] sm:$0xf] }
 0x3bf   : > { %1215 = vadd.xlane.f32.xlu0 %v1214_v27  ;;  %v1287_v29 = vsel %vm1239_vm5, %v1233_v28, 0 }
 0x3c0   : > { %2150 = vmatpush3.bf16.msra.mxu0 %v1287_v29 }
 0x3c1   : > { %v2347_v30 = vpop.eup %2346  ;;  %2161 = vmatprep.subr.bf16.mxu0 %v2620_v2 }
 0x3c2   : > { %v1217_v31 = vsel %vm988_vm4, %v2347_v30, 0.0 }
 0x3c3   : > { %1218 = vadd.xlane.f32.xlu1 %v1217_v31  ;;  %v2335_v31 = vld [vmem:[%s3029_s21 + $0x8] sm:$0xff]  }
 0x3d4   : > { %945 = vrot.lane.b32.xlu1 %v3120_v11, %s2631_s20  ;;  %s1740_s20 = sshll.u32 %s3096_s17, 4  ;;  %s3261_s20 = int_to_ptr.vmem [resolvable:$true] %s1740_s20 }
 0x3d5   : > { %960 = vrot.lane.b32.xlu0 %v3120_v11, %s2632_s2  ;;  %s2482_s25 = scalar_lea.vmem %s3261_s20, 128 }
 0x3d6   : > { %p2483_p4 = scmp.ne.s32.totalorder %s3261_s20, %s2482_s25 }
 0x444   : > { %v1210_v32 = vpop.xlane.xlu0 %1209 }
 0x445   : > { %2348 = vrcp.f32 %v1210_v32 }
 0x448   : > { %v1213_v33 = vpop.xlane.xlu1 %1212 }
 0x449   : > { %2350 = vrcp.f32 %v1213_v33 }
 0x44c   : > { %v1216_v34 = vpop.xlane.xlu0 %1215 }
 0x44d   : > { %2352 = vrcp.f32 %v1216_v34 }
 0x44f   : > { %v2349_v35 = vpop.eup %2348 }
 0x450   : > { %v1224_v36 = vmul.f32 %v2349_v35, %v2341_v18  ;;  %v961_v37 = vpop.permute.xlu0 %960  ;;  %v1219_v38 = vpop.xlane.xlu1 %1218  ;;  %v2048_v35 = vld [vmem:[%s810_s12] ss:$0 sm:$0xff] }
 0x451   : > { %964 = vst.msk [vmem:[#allocation5 + $0xc] sm:$0xf] %vm907_vm3, %v961_v37  ;;  %2354 = vrcp.f32 %v1219_v38  ;;  %v2049_v37 = vld [vmem:[%s3449_s9] ss:$0 sm:$0xff] }
 0x452   : > { %v1228_v39 = vpack.c.bf16 %v1224_v36, %v1224_v36 }
 0x453   : > { %v2351_v40 = vpop.eup %2350 }
 0x454   : > { %v1225_v41 = vmul.f32 %v2351_v40, %v2343_v22  ;;  %2146 = vmatmul.mubr.msk.bf16.vlgmr.msra.gmra.mrb[8].mxu1 %vm988_vm4, %v1228_v39  ;;  %v946_v42 = vpop.permute.xlu1 %945 }
 0x455   : > { %949 = vst.msk [vmem:[#allocation5 + $0x8] sm:$0xf] %vm907_vm3, %v946_v42  ;;  %2157 = vmatprep.mubr.msk.bf16.mxu1 %vm2621_vm1, %v2620_v2  ;;  %v2337_v42 = vld [vmem:[%s3080_s16 + $0x8] sm:$0xff]  }
 0x456   : > { %v1229_v11 = vpack.c.bf16 %v1225_v41, %v1225_v41  ;;  %v2336_v41 = vld [vmem:[%s3080_s16] sm:$0xff]  }
 0x457   : > { %v2353_v43 = vpop.eup %2352 }
 0x458   : > { %2152 = vmatmul.mubr.msk.bf16.vlgmr.msra.gmra.mrb[12].mxu0 %vm988_vm4, %v1229_v11  ;;  %v1235_v44 = vld [vmem:[#allocation5 + $0xc] sm:$0xf]  ;;  %v1226_v47 = vmul.f32 %v2353_v43, %v2345_v26  ;;  %v2339_v43 = vld [vmem:[%s3080_s16 + $0x18] sm:$0xff]  }
 0x459   : > { %v1379_v45 = vsel %vm1239_vm5, %v1235_v44, 0  ;;  %2163 = vmatprep.mubr.msk.bf16.mxu0 %vm2621_vm1, %v2620_v2  ;;  %v2338_v11 = vld [vmem:[%s3080_s16 + $0x10] sm:$0xff]  }
 0x45a   : > { %2162 = vmatpush3.bf16.msra.mxu0 %v1379_v45  ;;  %v1230_v52 = vpack.c.bf16 %v1226_v47, %v1226_v47 }
 0x45b   : > { %v2355_v46 = vpop.eup %2354  ;;  %2175 = vmatprep.subr.bf16.mxu0 %v2620_v2 }
 0x45c   : > { %v1227_v48 = vmul.f32 %v2355_v46, %v2347_v30  ;;  %v1234_v49 = vld [vmem:[#allocation5 + $0x8] sm:$0xf] }
 0x45d   : > { %v1333_v50 = vsel %vm1239_vm5, %v1234_v49, 0  ;;  %v2334_v30 = vld [vmem:[%s3029_s21] sm:$0xff]   ;;  %s3450_s21 = scalar_lea.vmem [#allocation12], %s3021_s4  ;;  %s3452_s4 = sld [smem:[#allocation25_spill]] }
 0x45e   : > { %2156 = vmatpush3.bf16.msra.mxu1 %v1333_v50  ;;  %v1231_v51 = vpack.c.bf16 %v1227_v48, %v1227_v48  ;;  %v2050_v44 = vld [vmem:[%s3450_s21] ss:$0 sm:$0xff] }
 0x45f   : > { %2167 = vmatprep.subr.bf16.mxu1 %v2620_v2 }
 0x460   : > { %2164 = vmatmul.mubr.msk.bf16.vlgmr.msra.gmra.mrb[16].mxu0 %vm988_vm4, %v1231_v51 }
 0x461   : > { %2158 = vmatmul.mubr.msk.bf16.vlgmr.msra.gmra.mrb[12].mxu1 %vm988_vm4, %v1230_v52  ;;  %2179 = vmatprep.mubr.msk.bf16.mxu0 %vm2621_vm1, %v2620_v2 }
 0x462   : > { %2171 = vmatprep.mubr.msk.bf16.mxu1 %vm2621_vm1, %v2620_v2  ;;  %2168 = vmatpush3.bf16.msra.mxu1 %v2332_v53 }
 0x463   : > { %2169 = vmatprep.subr.bf16.mxu1 %v2620_v2  ;;  %2176 = vmatpush3.bf16.msra.mxu0 %v2334_v30  ;;  %s2063_s30 = sshll.u32 %s3452_s4, 7 }
 0x464   : > { %2177 = vmatprep.subr.bf16.mxu0 %v2620_v2 }
 0x466   : > { %2170 = vmatpush3.bf16.msra.mxu1 %v2333_v55 }
 0x467   : > { %2183 = vmatprep.subr.bf16.mxu1 %v2620_v2  ;;  %2178 = vmatpush3.bf16.msra.mxu0 %v2335_v31 }
 0x527   : > { %v1277_v54 = vpop.f32.mrb[8].mxu1 }
 0x528   : > { %v2147_v56 = vpop.f32.mrb[9].mxu1 }
 0x529   : > { %v1280_v57 = vpop.f32.mrb[10].mxu1 }
 0x52a   : > { %v2148_v58 = vpop.f32.mrb[11].mxu1 }
 0x52b   : > { %v1323_v59 = vpop.f32.mrb[12].mxu0 }
 0x52c   : > { %1422 = vrot.lane.b32.xlu1 %v1323_v59, %s2633_s14  ;;  %v2153_v60 = vpop.f32.mrb[13].mxu0 }
 0x52d   : > { %v1326_v61 = vpop.f32.mrb[14].mxu0 }
 0x52e   : > { %v2154_v62 = vpop.f32.mrb[15].mxu0 }
 0x533   : > { %v1415_v63 = vpop.f32.mrb[16].mxu0 }
 0x534   : > { %v1369_v0 = vpop.f32.mrb[12].mxu1  ;;  %1430 = vrot.lane.b32.xlu1 %v1415_v63, %s2634_s0  ;;  %v2165_v1 = vpop.f32.mrb[17].mxu0  ;;  %s3456_s0 = sld [smem:[#allocation50_spill]] }
 0x535   : > { %1426 = vrot.lane.b32.xlu0 %v1369_v0, %s2635_s28  ;;  %v2159_v3 = vpop.f32.mrb[13].mxu1  ;;  %v1418_v5 = vpop.f32.mrb[18].mxu0 }
 0x536   : > { %v1372_v6 = vpop.f32.mrb[14].mxu1  ;;  %v2166_v7 = vpop.f32.mrb[19].mxu0 }
 0x537   : > { %v2160_v8 = vpop.f32.mrb[15].mxu1 }
 0x53a   : > { %s3259_s28 = scalar_lea.hbm %s3456_s0, %s2063_s30 }
 0x59e   : > { %v1423_v9 = vpop.permute.xlu1 %1422 }
 0x59f   : > { %v1433_v10 = vsel %vm988_vm4, %v1277_v54, %v1423_v9 }
 0x5a6   : > { %v1431_v13 = vpop.permute.xlu1 %1430 }
 0x5a7   : > { %v1427_v12 = vpop.permute.xlu0 %1426 }
 0x5a8   : > { %v1435_v14 = vsel %vm1434_vm6, %v1433_v10, %v1427_v12  ;;  %v2060_v10 = vld [vmem:[%s821_s8] ss:$0 sm:$0xff]  ;;  %s1726_s8 = scalar_lea.sflag [#allocation8], %s3007_s15 }
 0x5a9   : > { %v1437_v15 = vsel %vm1436_vm7, %v1435_v14, %v1431_v13  ;;  %v2061_v13 = vld [vmem:[%s824_s18] ss:$0 sm:$0xff]  ;;  %s2636_s18 = smov [#allocation14]  }
 0x5aa   : > { %v1438_v16 = vpack.c.bf16 %v1437_v15, %v1437_v15  ;;  %s2486_s3 = sshll.u32 %s2636_s18, 4  ;;  %s2487_s3 = int_to_ptr.vmem [resolvable:$false] %s2486_s3 }
 0x5ab   : > { %s2488_s7 = scalar_lea.vmem %s2487_s3, 256  ;;  %p2489_p10 = scmp.lt.s32.totalorder %s3261_s20, %s2487_s3 }
 0x5ac   : > { %2172 = vmatmul.mubr.msk.bf16.vlgmr.msra.gmra.mrb[16].mxu1 %vm862_vm2, %v1438_v16  ;;  %p2490_p3 = scmp.lt.s32.totalorder %s2488_s7, %s2482_s25 }
 0x5ad   : > { %2191 = vmatprep.mubr.msk.bf16.mxu1 %vm2621_vm1, %v2620_v2  ;;  %2184 = vmatpush3.bf16.msra.mxu1 %v2336_v41 }
 0x5ae   : > { %2185 = vmatprep.subr.bf16.mxu1 %v2620_v2  ;;  %p2491_p8 = por %p2490_p3, %p2489_p10 }
 0x5b1   : > { %2186 = vmatpush3.bf16.msra.mxu1 %v2337_v42 }
 0x5b2   : > { %2187 = vmatprep.subr.bf16.mxu1 %v2620_v2 }
 0x5b5   : > { %2188 = vmatpush3.bf16.msra.mxu1 %v2338_v11 }
 0x5b6   : > { %2189 = vmatprep.subr.bf16.mxu1 %v2620_v2  ;;  %v2054_v2 = vld [vmem:[%s818_s22] ss:$0 sm:$0xff]  ;;  %s3453_s22 = sld [smem:[#allocation32_spill]] }
 0x5b9   : > { %2190 = vmatpush3.bf16.msra.mxu1 %v2339_v43 }
 0x5bc   : > { %p3457_p9 = scmp.ne.s32.totalorder %s3453_s22, 0 }
 0x5be   : > { %p2484_p2 = pnand %p2483_p4, %p3457_p9 }
 0x5c0   : > { %p2485_p0 = pneg %p2484_p2 }
 0x5c2   : > { %p2492_p11 = pnand %p2491_p8, %p2485_p0 }
 0x67f   : > { %v1500_v18 = vpop.f32.mrb[16].mxu1 }
 0x680   : > { %v1501_v19 = vadd.f32 %v2044_v17, %v1500_v18  ;;  %v2173_v20 = vpop.f32.mrb[17].mxu1 }
 0x681   : > { %v1503_v21 = vpop.f32.mrb[18].mxu1 }
 0x682   : > { %v2174_v22 = vpop.f32.mrb[19].mxu1  ;;  %v1506_v23 = vadd.f32 %v1501_v19, %v3104_v4 }
 0x684   : > { %v1509_v24 = vsel %vm862_vm2, %v1506_v23, 0.0 }
 0x685   : > { %1510 = vadd.xlane.f32.xlu0 %v1509_v24 }
 0x712   : > { %v1511_v25 = vpop.xlane.xlu0 %1510 }
 0x713   : > { %v1513_v26 = vmul.f32 0.03125, %v1511_v25 }
 0x715   : > { %v1514_v27 = vsub.f32 %v1506_v23, %v1513_v26 }
 0x717   : > { %v1515_v28 = vmul.f32 %v1514_v27, %v1514_v27 }
 0x719   : > { %v1516_v29 = vsel %vm862_vm2, %v1515_v28, 0.0 }
 0x71a   : > { %1517 = vadd.xlane.f32.xlu1 %v1516_v29 }
 0x7a7   : > { %v1518_v4 = vpop.xlane.xlu1 %1517 }
 0x7a8   : > { %v1519_v32 = vmul.f32 0.03125, %v1518_v4 }
 0x7aa   : > { %v1520_v33 = vadd.f32 1e-12, %v1519_v32 }
 0x7ac   : > { %2356 = vrsqrt.f32 %v1520_v33 }
 0x7b6   : > { %v2357_v34 = vpop.eup %2356 }
 0x7b7   : > { %v1522_v36 = vmul.f32 %v2357_v34, %v1514_v27 }
 0x7b9   : > { %v1529_v38 = vmul.f32 %v2048_v35, %v1522_v36 }
 0x7bb   : > { %v1536_v39 = vadd.f32 %v2049_v37, %v1529_v38 }
 0x7bd   : > { %v1537_v40 = vpack.c.bf16 %v1536_v39, %v1536_v39 }
 0x7bf   : > { %2180 = vmatmul.mubr.msk.bf16.vlgmr.msra.gmra.mrb[20].mxu0 %vm862_vm2, %v1537_v40 }
 0x892   : > { %v1598_v45 = vpop.f32.mrb[20].mxu0 }
 0x893   : > { %v1599_v46 = vadd.f32 %v2050_v44, %v1598_v45  ;;  %v2181_v47 = vpop.f32.mrb[21].mxu0 }
 0x894   : > { %v1601_v48 = vpop.f32.mrb[22].mxu0 }
 0x895   : > { %v1605_v49 = vmul.f32 0.70710677, %v1599_v46  ;;  %v2182_v50 = vpop.f32.mrb[23].mxu0  ;;  %v1604_v52 = vmul.f32 0.5, %v1599_v46 }
 0x897   : > { %2358 = verf.f32 %v1605_v49 }
 0x8a1   : > { %v2359_v51 = vpop.eup %2358 }
 0x8a2   : > { %v1607_v53 = vadd.f32 1.0, %v2359_v51 }
 0x8a4   : > { %v1608_v54 = vmul.f32 %v1607_v53, %v1604_v52 }
 0x8a6   : > { %v1609_v55 = vpack.c.bf16 %v1608_v54, %v1608_v54 }
 0x8a8   : > { %2192 = vmatmul.mubr.msk.bf16.vlgmr.msra.gmra.mrb[20].mxu1 %vm1649_vm8, %v1609_v55 }
 0x97b   : > { %v1687_v56 = vpop.f32.mrb[20].mxu1 }
 0x97c   : > { %v1688_v57 = vadd.f32 %v2054_v2, %v1687_v56  ;;  %v2193_v58 = vpop.f32.mrb[21].mxu1 }
 0x97d   : > { %v1690_v59 = vpop.f32.mrb[22].mxu1 }
 0x97e   : > { %v2194_v60 = vpop.f32.mrb[23].mxu1  ;;  %v1693_v61 = vadd.f32 %v1688_v57, %v1536_v39 }
 0x980   : > { %v1696_v62 = vsel %vm862_vm2, %v1693_v61, 0.0 }
 0x981   : > { %1697 = vadd.xlane.f32.xlu0 %v1696_v62 }
 0xa0e   : > { %v1698_v63 = vpop.xlane.xlu0 %1697 }
 0xa0f   : > { %v1699_v0 = vmul.f32 0.03125, %v1698_v63 }
 0xa11   : > { %v1700_v1 = vsub.f32 %v1693_v61, %v1699_v0 }
 0xa13   : > { %v1701_v3 = vmul.f32 %v1700_v1, %v1700_v1 }
 0xa15   : > { %v1702_v5 = vsel %vm862_vm2, %v1701_v3, 0.0 }
 0xa16   : > { %1703 = vadd.xlane.f32.xlu0 %v1702_v5 }
 0xaa3   : > { %v1704_v6 = vpop.xlane.xlu0 %1703 }
 0xaa4   : > { %v1705_v7 = vmul.f32 0.03125, %v1704_v6 }
 0xaa6   : > { %v1706_v8 = vadd.f32 1e-12, %v1705_v7 }
 0xaa8   : > { %2360 = vrsqrt.f32 %v1706_v8 }
 0xab2   : > { %v2361_v9 = vpop.eup %2360 }
 0xab3   : > { %v1708_v12 = vmul.f32 %v2361_v9, %v1700_v1 }
 0xab5   : > { %v1715_v14 = vmul.f32 %v2060_v10, %v1708_v12 }
 0xab7   : > { %v1722_v15 = vadd.f32 %v2061_v13, %v1715_v14 }
 0xab9   : > { %1723 = vst.msk [vmem:[%s3096_s17] sm:$0xff] %vm862_vm2, %v1722_v15  ;;  %1724 = vst.msk [vmem:[#allocation2] sm:$0xff] %vm862_vm2, %v1722_v15 }
 0xaba   : > { %2495 = shalt.err (!%p2492_p11)
}
 0xabb   : > { %s2496_s15 = scalar_lea.hbm %s3259_s28, 128  ;;  %s2500_s27 = scalar_lea.hbm %s3456_s0, 256 }
 0xabc   : > { %p2497_p1 = scmp.ne.s32.totalorder %s3259_s28, %s2496_s15  ;;  %p2501_p5 = scmp.lt.u32.totalorder %s3259_s28, %s3456_s0 }
 0xabd   : > { %p2502_p12 = scmp.lt.u32.totalorder %s2500_s27, %s2496_s15  ;;  %p2504_p4 = scmp.lt.u32.totalorder %s2496_s15, %s3259_s28 }
 0xabe   : > { %p2498_p13 = pnand %p2497_p1, %p3457_p9 }
 0xabf   : > { %p2503_p7 = por %p2502_p12, %p2501_p5 }
 0xac0   : > { %p2499_p6 = pneg %p2498_p13 }
 0xac1   : > { %p2505_p2 = por %p2504_p4, %p2503_p7 }
 0xac3   : > { %p2506_p0 = pnand %p2505_p2, %p2499_p6 }
 0xac5   : > { %2509 = shalt.err (!%p2506_p0)
}
 0xac6   : > { %2203 = dma.vmem_to_hbm [thread:$0]  (%p3457_p9), %s3261_s20, 128, %s3259_s28, %s1726_s8  }
 0xac7 PF: > { %s3458_s24 = sld [smem:[#allocation28_spill]]  ;;  %s3459_s9 = sld [smem:[#allocation21_spill]] }
 0xac8   : > { %s3460_s21 = sld [smem:[#allocation33_spill]] }
 0xacd   : > { %p2223_p10 = scmp.ge.s32.totalorder %s3458_s24, 2  ;;  %s1752_s12 = sand.u32 1, %s3459_s9  }
 0xace   : > { %p3461_p3 = scmp.ne.s32.totalorder %s3460_s21, 0  ;;  %s1753_s16 = scalar_lea.sflag [#allocation8], %s1752_s12 }
 0xad0   : > { %p2219_p8 = pnand %p2223_p10, %p3461_p3 }
 0xad2   : > { %2567 = dma.done.wait (!%p2219_p8), %s1753_s16, 128  }
 0xad3   : > { %2569 = vsyncadd (!%p2219_p8), %s1753_s16, 4294967168  ;;  %s37_s28 = sadd.s32 1, %s3458_s24   ;;  %s3462_s18 = sld [smem:[#allocation19_spill]] }
 0xad4   : > { %p34_p11 = scmp.ge.s32.totalorder %s37_s28, 6   ;;  %s3463_s19 = sld [smem:[#allocation20_spill]] }
 0xad5   : > { %s3464_s20 = sld [smem:[#allocation30_spill]]  ;;  %s3465_s21 = sld [smem:[#allocation22_spill]] }
 0xad6   : > { %s3466_s22 = sld [smem:[#allocation23_spill]]  ;;  %s3467_s23 = sld [smem:[#allocation34_spill]] }
 0xad7   : > { %s3468_s24 = sld [smem:[#allocation26_spill]]  ;;  %s3469_s25 = sld [smem:[#allocation27_spill]] }
 0xad8   : > { %s3470_s26 = sld [smem:[#allocation29_spill]]  ;;  %s3471_s27 = sld [smem:[#allocation31_spill]] }
 0xad9   :  { %36 = sbr.rel (!%p34_p11) target bundleno = 30 (0x1e), region = 214 }
 0xae0   :  { %1758 = vsyncpa [#allocation7], 1 }
 0xae1   :  { %1760 = vsyncpa [#allocation7 + $0x1], 1 }
 0xae2   :  { %1761 = vsyncpa [#allocation10], 1 }
 0xae3   :  { %1763 = vsyncpa [#allocation10 + $0x1], 1 }
 0xae4   :  { %1764 = vsyncpa [#allocation13], 1 }
 0xae5   :  { %1766 = vsyncpa [#allocation13 + $0x1], 1 }
 0xae6   :  { %1767 = vsyncpa [#allocation8], 1 }
 0xae7   :  { %1769 = vsyncpa [#allocation8 + $0x1], 1 }

</bundles_post_ra>
